<compile_context>
chip_gen: v7x
topology: tpu7x:2x2x1
jax: 0.10.0
libtpu: 0.0.40
codegen_flags: <defaults>
</compile_context>

<pallas_src>
from functools import partial

import jax
import jax.numpy as jnp
from jax import lax
from jax.experimental import pallas as pl
from jax.experimental.pallas import tpu as pltpu

LANE = 128


def _round_up(x, m):
    return (x + m - 1) // m * m


def _pick_row_tile(h_out, w_out, max_rows=512):
    """Largest divisor of h_out with row_tile * w_out <= max_rows; prefer >=2 row
    blocks when h_out allows (gives v7x's second TensorCore something to do)."""
    target = max(1, max_rows // max(w_out, 1))
    divisors = [d for d in range(1, h_out + 1) if h_out % d == 0 and d <= target]
    best = divisors[-1] if divisors else 1
    if best == h_out and h_out > 1:
        smaller = [d for d in divisors if d < h_out]
        if smaller:
            best = smaller[-1]
    return best


def _conv_bn_act_kernel(*refs, kh_size, kw_size, row_tile, w_out, has_residual):
    # refs (no residual):  x_ref, w_ref, bias_ref, o_ref
    # refs (residual):     x_ref, w_ref, bias_ref, res_ref, o_ref
    #   x_ref:    (1, Hp, Wp, Cinp)   bf16, spatially pre-padded, channel-padded,
    #                                 resident across the row-block grid axis
    #   w_ref:    (KH*KW, Cinp, Coutp) bf16, BN scale already folded in
    #   bias_ref: (1, Coutp)          f32 fused BN bias
    #   res_ref:  (1, row_tile, w_out, Coutp) f32 residual (added after SiLU)
    #   o_ref:    (1, row_tile, w_out, Coutp)
    if has_residual:
        x_ref, w_ref, bias_ref, res_ref, o_ref = refs
    else:
        x_ref, w_ref, bias_ref, o_ref = refs
        res_ref = None

    cinp = x_ref.shape[-1]
    coutp = o_ref.shape[-1]
    r0 = pl.multiple_of(pl.program_id(1) * row_tile, row_tile)

    acc = jnp.zeros((row_tile * w_out, coutp), jnp.float32)
    # Direct convolution as KH*KW shifted matmuls; each dot is lane-dense
    # (K = Cinp >= 128, N = Coutp >= 128) so the MXU is well fed.
    for kh in range(kh_size):
        for kw in range(kw_size):
            patch = x_ref[0, pl.ds(r0 + kh, row_tile), pl.ds(kw, w_out), :]
            patch = patch.reshape(row_tile * w_out, cinp)
            acc += jnp.dot(patch, w_ref[kh * kw_size + kw],
                           preferred_element_type=jnp.float32)

    out = acc + bias_ref[0]                        # fused BN bias (scale is in w)
    out = out * (1.0 / (1.0 + jnp.exp(-out)))      # SiLU in f32 (exp -> EUP)
    out = out.reshape(1, row_tile, w_out, coutp)
    if has_residual:
        out = out + res_ref[...].astype(jnp.float32)
    o_ref[...] = out.astype(o_ref.dtype)


def _conv_bn_silu_layer(x_nhwc, w_packed, bias, *, ksize, padding,
                        residual=None, out_dtype=jnp.bfloat16):
    """One fused Conv2d(bias=False) + BN(eval) + SiLU [+ residual] layer.

    x_nhwc:   (N, H, W, Cinp) bf16, channel-padded (Cinp % 128 == 0).
    w_packed: (KH*KW, Cinp, Coutp) bf16, BN scale folded in.
    bias:     (1, Coutp) f32.
    residual: optional (N, H_out, W_out, Coutp) f32, added after the SiLU.
    """
    N, H, W, cinp = x_nhwc.shape
    khkw, cinp_w, coutp = w_packed.shape
    assert cinp_w == cinp
    kh = kw = ksize
    h_out = H + 2 * padding - kh + 1
    w_out = W + 2 * padding - kw + 1

    xp = jnp.pad(x_nhwc, ((0, 0), (padding, padding), (padding, padding), (0, 0)))
    hp, wp = xp.shape[1], xp.shape[2]

    row_tile = _pick_row_tile(h_out, w_out)
    grid = (N, h_out // row_tile)

    in_specs = [
        # whole padded image per batch element, resident across the row axis
        pl.BlockSpec((1, hp, wp, cinp), lambda n, r: (n, 0, 0, 0)),
        pl.BlockSpec((khkw, cinp, coutp), lambda n, r: (0, 0, 0)),
        pl.BlockSpec((1, coutp), lambda n, r: (0, 0)),
    ]
    args = [xp, w_packed, bias]
    if residual is not None:
        in_specs.append(pl.BlockSpec((1, row_tile, w_out, coutp),
                                     lambda n, r: (n, r, 0, 0)))
        args.append(residual)

    kernel = partial(_conv_bn_act_kernel, kh_size=kh, kw_size=kw,
                     row_tile=row_tile, w_out=w_out,
                     has_residual=residual is not None)

    out_bytes = N * h_out * w_out * coutp * jnp.dtype(out_dtype).itemsize
    res_bytes = (residual.size * residual.dtype.itemsize
                 if residual is not None else 0)
    cost = pl.CostEstimate(
        flops=2 * N * h_out * w_out * khkw * cinp * coutp,
        transcendentals=N * h_out * w_out * coutp,
        bytes_accessed=(xp.size * xp.dtype.itemsize
                        + w_packed.size * w_packed.dtype.itemsize
                        + out_bytes + res_bytes))

    return pl.pallas_call(
        kernel,
        out_shape=jax.ShapeDtypeStruct((N, h_out, w_out, coutp), out_dtype),
        grid_spec=pltpu.PrefetchScalarGridSpec(
            num_scalar_prefetch=0,
            grid=grid,
            in_specs=in_specs,
            out_specs=pl.BlockSpec((1, row_tile, w_out, coutp),
                                   lambda n, r: (n, r, 0, 0)),
        ),
        compiler_params=pltpu.CompilerParams(
            dimension_semantics=("parallel", "parallel"),
            vmem_limit_bytes=32 * 1024 * 1024),
        cost_estimate=cost,
    )(*args)


def _fold_conv_bn(w_oihw, gamma, beta, mean, var, *, eps, cinp, coutp):
    """Fold eval-mode BN scale into the conv weights; return packed bf16 weights
    (KH*KW, Cinp, Coutp) with zero-padded channels and the f32 fused bias."""
    cout, cin, kh, kw = w_oihw.shape
    std = jnp.sqrt(var.astype(jnp.float32) + eps)
    scale = gamma.astype(jnp.float32) / std
    bias = beta.astype(jnp.float32) - mean.astype(jnp.float32) * scale
    wf = w_oihw.astype(jnp.float32) * scale[:, None, None, None]
    wt = jnp.transpose(wf, (2, 3, 1, 0)).reshape(kh * kw, cin, cout)
    wt = jnp.pad(wt, ((0, 0), (0, cinp - cin), (0, coutp - cout)))
    bias_p = jnp.pad(bias, (0, coutp - cout)).reshape(1, coutp)
    return wt.astype(jnp.bfloat16), bias_p


def bottleneck_forward(x_nchw, params, *, shortcut=True, eps=1e-5):
    """Bottleneck.forward: x + cv2(cv1(x)) if (shortcut and c1 == c2) else cv2(cv1(x)).
    cv1/cv2 are Conv2d(bias=False) + BatchNorm2d(eval) + SiLU, stride 1, groups=1."""
    N, c1, H, W = x_nchw.shape
    c_, c1_w, k1, _ = params["w1"].shape
    c2, c_w, k2, _ = params["w2"].shape
    assert c1_w == c1 and c_w == c_, "groups != 1 not supported"  # TODO(synk): grouped conv (g > 1)
    add = shortcut and c1 == c2

    c1p = _round_up(c1, LANE)
    c_p = _round_up(c_, LANE)
    c2p = _round_up(c2, LANE)

    # NCHW -> NHWC (channels on lanes), zero-pad channels to a multiple of 128.
    # TODO(synk): keep the whole network NHWC end-to-end to kill these transposes.
    x_nhwc = jnp.transpose(x_nchw, (0, 2, 3, 1)).astype(jnp.float32)
    x_nhwc_p = jnp.pad(x_nhwc, ((0, 0), (0, 0), (0, 0), (0, c1p - c1)))

    w1p, b1p = _fold_conv_bn(params["w1"], params["gamma1"], params["beta1"],
                             params["mean1"], params["var1"], eps=eps,
                             cinp=c1p, coutp=c_p)
    w2p, b2p = _fold_conv_bn(params["w2"], params["gamma2"], params["beta2"],
                             params["mean2"], params["var2"], eps=eps,
                             cinp=c_p, coutp=c2p)

    # cv1: bf16 in / bf16 out (feeds cv2 directly, channel padding is preserved).
    y1 = _conv_bn_silu_layer(x_nhwc_p.astype(jnp.bfloat16), w1p, b1p,
                             ksize=k1, padding=k1 // 2,
                             out_dtype=jnp.bfloat16)
    # cv2: bf16 in / f32 out, with the residual add fused in-kernel (after SiLU).
    residual = x_nhwc_p if add else None          # c2p == c1p when add
    y2 = _conv_bn_silu_layer(y1, w2p, b2p, ksize=k2, padding=k2 // 2,
                             residual=residual, out_dtype=jnp.float32)

    out = y2[..., :c2]
    return jnp.transpose(out, (0, 3, 1, 2))        # back to NCHW


def _reference_bottleneck(x_nchw, params, *, shortcut=True, eps=1e-5):
    """Pure-JAX reference with the same bf16 rounding of activations / scale-folded
    weights as the kernels (f32 accumulation), so the comparison is tight."""
    def conv_bn_silu(x, w, gamma, beta, mean, var):
        std = jnp.sqrt(var + eps)
        scale = gamma / std
        bias = beta - mean * scale
        wf = (w * scale[:, None, None, None]).astype(jnp.bfloat16).astype(jnp.float32)
        xr = x.astype(jnp.bfloat16).astype(jnp.float32)
        k = w.shape[-1]
        y = lax.conv_general_dilated(
            xr, wf, window_strides=(1, 1),
            padding=((k // 2, k // 2), (k // 2, k // 2)),
            dimension_numbers=("NCHW", "OIHW", "NCHW"))
        y = y + bias[None, :, None, None]
        return y * jax.nn.sigmoid(y)

    c1 = x_nchw.shape[1]
    c2 = params["w2"].shape[0]
    y = conv_bn_silu(x_nchw, params["w1"], params["gamma1"], params["beta1"],
                     params["mean1"], params["var1"])
    y = conv_bn_silu(y, params["w2"], params["gamma2"], params["beta2"],
                     params["mean2"], params["var2"])
    if shortcut and c1 == c2:
        y = x_nchw + y
    return y


if __name__ == "__main__":
    # Bottleneck(c1=4, c2=4, shortcut=True, g=1, k=(3, 3), e=0.5)  ->  c_ = 2
    c1, c2, e = 4, 4, 0.5
    c_ = int(c2 * e)
    N, H, W = 2, 16, 16
    k = 3

    key = jax.random.PRNGKey(0)
    keys = jax.random.split(key, 11)

    x = jax.random.normal(keys[0], (N, c1, H, W), jnp.float32)
    params = dict(
        w1=jax.random.normal(keys[1], (c_, c1, k, k), jnp.float32) * 0.1,
        gamma1=1.0 + 0.1 * jax.random.normal(keys[2], (c_,), jnp.float32),
        beta1=0.1 * jax.random.normal(keys[3], (c_,), jnp.float32),
        mean1=0.1 * jax.random.normal(keys[4], (c_,), jnp.float32),
        var1=jnp.abs(jax.random.normal(keys[5], (c_,), jnp.float32)) + 0.5,
        w2=jax.random.normal(keys[6], (c2, c_, k, k), jnp.float32) * 0.1,
        gamma2=1.0 + 0.1 * jax.random.normal(keys[7], (c2,), jnp.float32),
        beta2=0.1 * jax.random.normal(keys[8], (c2,), jnp.float32),
        mean2=0.1 * jax.random.normal(keys[9], (c2,), jnp.float32),
        var2=jnp.abs(jax.random.normal(keys[10], (c2,), jnp.float32)) + 0.5,
    )

    out = bottleneck_forward(x, params, shortcut=True)
    out = jax.block_until_ready(out)

    ref = _reference_bottleneck(x, params, shortcut=True)
    assert out.shape == (N, c2, H, W)
    max_err = jnp.max(jnp.abs(out - ref))
    assert jnp.allclose(out, ref, atol=2e-2, rtol=2e-2), f"max abs err {max_err}"

    print("KERNEL_OK")
</pallas_src>

<mosaic_0001>
module attributes {stable_mosaic.version = 11 : i64} {
  func.func @_conv_bn_act_kernel(%arg0: i32, %arg1: i32, %arg2: memref<1x18x18x128xbf16, #tpu.memory_space<vmem>>, %arg3: memref<9x128x128xbf16, #tpu.memory_space<vmem>>, %arg4: memref<1x128xf32, #tpu.memory_space<vmem>>, %arg5: memref<1x8x16x128xbf16, #tpu.memory_space<vmem>>) attributes {dimension_semantics = [#tpu.dimension_semantics<parallel>, #tpu.dimension_semantics<parallel>], iteration_bounds = array<i64: 2, 2>, scalar_prefetch = 0 : i64, scratch_operands = 0 : i64, tpu.core_type = #tpu.core_type<tc>, window_params = [{transform_indices = @transform_0, window_bounds = array<i64: 1, 18, 18, 128>}, {pipeline_mode = #tpu.pipeline_mode<synchronous>, transform_indices = @transform_1, window_bounds = array<i64: 9, 128, 128>}, {pipeline_mode = #tpu.pipeline_mode<synchronous>, transform_indices = @transform_2, window_bounds = array<i64: 1, 128>}, {transform_indices = @transform_3, window_bounds = array<i64: 1, 8, 16, 128>}]} {
    %c8_i32 = arith.constant 8 : i32
    %0 = arith.muli %arg1, %c8_i32 : i32
    %1 = tpu.assume_multiple %0, 8 : i32
    %cst = arith.constant 0.000000e+00 : f32
    %2 = vector.broadcast %cst : f32 to vector<128x128xf32>
    %c0_i32 = arith.constant 0 : i32
    %3 = arith.addi %1, %c0_i32 : i32
    %c0 = arith.constant 0 : index
    %4 = arith.index_cast %3 : i32 to index
    %c0_0 = arith.constant 0 : index
    %c0_1 = arith.constant 0 : index
    %5 = vector.load %arg2[%c0, %4, %c0_0, %c0_1] : memref<1x18x18x128xbf16, #tpu.memory_space<vmem>>, vector<1x8x16x128xbf16>
    %6 = vector.shape_cast %5 : vector<1x8x16x128xbf16> to vector<8x16x128xbf16>
    %7 = vector.shape_cast %6 : vector<8x16x128xbf16> to vector<128x128xbf16>
    %c0_2 = arith.constant 0 : index
    %c0_3 = arith.constant 0 : index
    %c0_4 = arith.constant 0 : index
    %8 = vector.load %arg3[%c0_2, %c0_3, %c0_4] : memref<9x128x128xbf16, #tpu.memory_space<vmem>>, vector<1x128x128xbf16>
    %9 = vector.shape_cast %8 : vector<1x128x128xbf16> to vector<128x128xbf16>
    %cst_5 = arith.constant dense<0.000000e+00> : vector<128x128xf32>
    %10 = tpu.matmul %7, %9, %cst_5 {dimension_numbers = #tpu.dot_dimension_numbers<[1], [0], [0], [1], [0, 0, 1, 1], [], []>} : vector<128x128xbf16>, vector<128x128xbf16>, vector<128x128xf32> -> vector<128x128xf32>
    %11 = arith.addf %2, %10 : vector<128x128xf32>
    %c0_i32_6 = arith.constant 0 : i32
    %12 = arith.addi %1, %c0_i32_6 : i32
    %c0_7 = arith.constant 0 : index
    %13 = arith.index_cast %12 : i32 to index
    %c1 = arith.constant 1 : index
    %c0_8 = arith.constant 0 : index
    %14 = vector.load %arg2[%c0_7, %13, %c1, %c0_8] : memref<1x18x18x128xbf16, #tpu.memory_space<vmem>>, vector<1x8x16x128xbf16>
    %15 = vector.shape_cast %14 : vector<1x8x16x128xbf16> to vector<8x16x128xbf16>
    %16 = vector.shape_cast %15 : vector<8x16x128xbf16> to vector<128x128xbf16>
    %c1_9 = arith.constant 1 : index
    %c0_10 = arith.constant 0 : index
    %c0_11 = arith.constant 0 : index
    %17 = vector.load %arg3[%c1_9, %c0_10, %c0_11] : memref<9x128x128xbf16, #tpu.memory_space<vmem>>, vector<1x128x128xbf16>
    %18 = vector.shape_cast %17 : vector<1x128x128xbf16> to vector<128x128xbf16>
    %cst_12 = arith.constant dense<0.000000e+00> : vector<128x128xf32>
    %19 = tpu.matmul %16, %18, %cst_12 {dimension_numbers = #tpu.dot_dimension_numbers<[1], [0], [0], [1], [0, 0, 1, 1], [], []>} : vector<128x128xbf16>, vector<128x128xbf16>, vector<128x128xf32> -> vector<128x128xf32>
    %20 = arith.addf %11, %19 : vector<128x128xf32>
    %c0_i32_13 = arith.constant 0 : i32
    %21 = arith.addi %1, %c0_i32_13 : i32
    %c0_14 = arith.constant 0 : index
    %22 = arith.index_cast %21 : i32 to index
    %c2 = arith.constant 2 : index
    %c0_15 = arith.constant 0 : index
    %23 = vector.load %arg2[%c0_14, %22, %c2, %c0_15] : memref<1x18x18x128xbf16, #tpu.memory_space<vmem>>, vector<1x8x16x128xbf16>
    %24 = vector.shape_cast %23 : vector<1x8x16x128xbf16> to vector<8x16x128xbf16>
    %25 = vector.shape_cast %24 : vector<8x16x128xbf16> to vector<128x128xbf16>
    %c2_16 = arith.constant 2 : index
    %c0_17 = arith.constant 0 : index
    %c0_18 = arith.constant 0 : index
    %26 = vector.load %arg3[%c2_16, %c0_17, %c0_18] : memref<9x128x128xbf16, #tpu.memory_space<vmem>>, vector<1x128x128xbf16>
    %27 = vector.shape_cast %26 : vector<1x128x128xbf16> to vector<128x128xbf16>
    %cst_19 = arith.constant dense<0.000000e+00> : vector<128x128xf32>
    %28 = tpu.matmul %25, %27, %cst_19 {dimension_numbers = #tpu.dot_dimension_numbers<[1], [0], [0], [1], [0, 0, 1, 1], [], []>} : vector<128x128xbf16>, vector<128x128xbf16>, vector<128x128xf32> -> vector<128x128xf32>
    %29 = arith.addf %20, %28 : vector<128x128xf32>
    %c1_i32 = arith.constant 1 : i32
    %30 = arith.addi %1, %c1_i32 : i32
    %c0_20 = arith.constant 0 : index
    %31 = arith.index_cast %30 : i32 to index
    %c0_21 = arith.constant 0 : index
    %c0_22 = arith.constant 0 : index
    %32 = vector.load %arg2[%c0_20, %31, %c0_21, %c0_22] : memref<1x18x18x128xbf16, #tpu.memory_space<vmem>>, vector<1x8x16x128xbf16>
    %33 = vector.shape_cast %32 : vector<1x8x16x128xbf16> to vector<8x16x128xbf16>
    %34 = vector.shape_cast %33 : vector<8x16x128xbf16> to vector<128x128xbf16>
    %c3 = arith.constant 3 : index
    %c0_23 = arith.constant 0 : index
    %c0_24 = arith.constant 0 : index
    %35 = vector.load %arg3[%c3, %c0_23, %c0_24] : memref<9x128x128xbf16, #tpu.memory_space<vmem>>, vector<1x128x128xbf16>
    %36 = vector.shape_cast %35 : vector<1x128x128xbf16> to vector<128x128xbf16>
    %cst_25 = arith.constant dense<0.000000e+00> : vector<128x128xf32>
    %37 = tpu.matmul %34, %36, %cst_25 {dimension_numbers = #tpu.dot_dimension_numbers<[1], [0], [0], [1], [0, 0, 1, 1], [], []>} : vector<128x128xbf16>, vector<128x128xbf16>, vector<128x128xf32> -> vector<128x128xf32>
    %38 = arith.addf %29, %37 : vector<128x128xf32>
    %c1_i32_26 = arith.constant 1 : i32
    %39 = arith.addi %1, %c1_i32_26 : i32
    %c0_27 = arith.constant 0 : index
    %40 = arith.index_cast %39 : i32 to index
    %c1_28 = arith.constant 1 : index
    %c0_29 = arith.constant 0 : index
    %41 = vector.load %arg2[%c0_27, %40, %c1_28, %c0_29] : memref<1x18x18x128xbf16, #tpu.memory_space<vmem>>, vector<1x8x16x128xbf16>
    %42 = vector.shape_cast %41 : vector<1x8x16x128xbf16> to vector<8x16x128xbf16>
    %43 = vector.shape_cast %42 : vector<8x16x128xbf16> to vector<128x128xbf16>
    %c4 = arith.constant 4 : index
    %c0_30 = arith.constant 0 : index
    %c0_31 = arith.constant 0 : index
    %44 = vector.load %arg3[%c4, %c0_30, %c0_31] : memref<9x128x128xbf16, #tpu.memory_space<vmem>>, vector<1x128x128xbf16>
    %45 = vector.shape_cast %44 : vector<1x128x128xbf16> to vector<128x128xbf16>
    %cst_32 = arith.constant dense<0.000000e+00> : vector<128x128xf32>
    %46 = tpu.matmul %43, %45, %cst_32 {dimension_numbers = #tpu.dot_dimension_numbers<[1], [0], [0], [1], [0, 0, 1, 1], [], []>} : vector<128x128xbf16>, vector<128x128xbf16>, vector<128x128xf32> -> vector<128x128xf32>
    %47 = arith.addf %38, %46 : vector<128x128xf32>
    %c1_i32_33 = arith.constant 1 : i32
    %48 = arith.addi %1, %c1_i32_33 : i32
    %c0_34 = arith.constant 0 : index
    %49 = arith.index_cast %48 : i32 to index
    %c2_35 = arith.constant 2 : index
    %c0_36 = arith.constant 0 : index
    %50 = vector.load %arg2[%c0_34, %49, %c2_35, %c0_36] : memref<1x18x18x128xbf16, #tpu.memory_space<vmem>>, vector<1x8x16x128xbf16>
    %51 = vector.shape_cast %50 : vector<1x8x16x128xbf16> to vector<8x16x128xbf16>
    %52 = vector.shape_cast %51 : vector<8x16x128xbf16> to vector<128x128xbf16>
    %c5 = arith.constant 5 : index
    %c0_37 = arith.constant 0 : index
    %c0_38 = arith.constant 0 : index
    %53 = vector.load %arg3[%c5, %c0_37, %c0_38] : memref<9x128x128xbf16, #tpu.memory_space<vmem>>, vector<1x128x128xbf16>
    %54 = vector.shape_cast %53 : vector<1x128x128xbf16> to vector<128x128xbf16>
    %cst_39 = arith.constant dense<0.000000e+00> : vector<128x128xf32>
    %55 = tpu.matmul %52, %54, %cst_39 {dimension_numbers = #tpu.dot_dimension_numbers<[1], [0], [0], [1], [0, 0, 1, 1], [], []>} : vector<128x128xbf16>, vector<128x128xbf16>, vector<128x128xf32> -> vector<128x128xf32>
    %56 = arith.addf %47, %55 : vector<128x128xf32>
    %c2_i32 = arith.constant 2 : i32
    %57 = arith.addi %1, %c2_i32 : i32
    %c0_40 = arith.constant 0 : index
    %58 = arith.index_cast %57 : i32 to index
    %c0_41 = arith.constant 0 : index
    %c0_42 = arith.constant 0 : index
    %59 = vector.load %arg2[%c0_40, %58, %c0_41, %c0_42] : memref<1x18x18x128xbf16, #tpu.memory_space<vmem>>, vector<1x8x16x128xbf16>
    %60 = vector.shape_cast %59 : vector<1x8x16x128xbf16> to vector<8x16x128xbf16>
    %61 = vector.shape_cast %60 : vector<8x16x128xbf16> to vector<128x128xbf16>
    %c6 = arith.constant 6 : index
    %c0_43 = arith.constant 0 : index
    %c0_44 = arith.constant 0 : index
    %62 = vector.load %arg3[%c6, %c0_43, %c0_44] : memref<9x128x128xbf16, #tpu.memory_space<vmem>>, vector<1x128x128xbf16>
    %63 = vector.shape_cast %62 : vector<1x128x128xbf16> to vector<128x128xbf16>
    %cst_45 = arith.constant dense<0.000000e+00> : vector<128x128xf32>
    %64 = tpu.matmul %61, %63, %cst_45 {dimension_numbers = #tpu.dot_dimension_numbers<[1], [0], [0], [1], [0, 0, 1, 1], [], []>} : vector<128x128xbf16>, vector<128x128xbf16>, vector<128x128xf32> -> vector<128x128xf32>
    %65 = arith.addf %56, %64 : vector<128x128xf32>
    %c2_i32_46 = arith.constant 2 : i32
    %66 = arith.addi %1, %c2_i32_46 : i32
    %c0_47 = arith.constant 0 : index
    %67 = arith.index_cast %66 : i32 to index
    %c1_48 = arith.constant 1 : index
    %c0_49 = arith.constant 0 : index
    %68 = vector.load %arg2[%c0_47, %67, %c1_48, %c0_49] : memref<1x18x18x128xbf16, #tpu.memory_space<vmem>>, vector<1x8x16x128xbf16>
    %69 = vector.shape_cast %68 : vector<1x8x16x128xbf16> to vector<8x16x128xbf16>
    %70 = vector.shape_cast %69 : vector<8x16x128xbf16> to vector<128x128xbf16>
    %c7 = arith.constant 7 : index
    %c0_50 = arith.constant 0 : index
    %c0_51 = arith.constant 0 : index
    %71 = vector.load %arg3[%c7, %c0_50, %c0_51] : memref<9x128x128xbf16, #tpu.memory_space<vmem>>, vector<1x128x128xbf16>
    %72 = vector.shape_cast %71 : vector<1x128x128xbf16> to vector<128x128xbf16>
    %cst_52 = arith.constant dense<0.000000e+00> : vector<128x128xf32>
    %73 = tpu.matmul %70, %72, %cst_52 {dimension_numbers = #tpu.dot_dimension_numbers<[1], [0], [0], [1], [0, 0, 1, 1], [], []>} : vector<128x128xbf16>, vector<128x128xbf16>, vector<128x128xf32> -> vector<128x128xf32>
    %74 = arith.addf %65, %73 : vector<128x128xf32>
    %c2_i32_53 = arith.constant 2 : i32
    %75 = arith.addi %1, %c2_i32_53 : i32
    %c0_54 = arith.constant 0 : index
    %76 = arith.index_cast %75 : i32 to index
    %c2_55 = arith.constant 2 : index
    %c0_56 = arith.constant 0 : index
    %77 = vector.load %arg2[%c0_54, %76, %c2_55, %c0_56] : memref<1x18x18x128xbf16, #tpu.memory_space<vmem>>, vector<1x8x16x128xbf16>
    %78 = vector.shape_cast %77 : vector<1x8x16x128xbf16> to vector<8x16x128xbf16>
    %79 = vector.shape_cast %78 : vector<8x16x128xbf16> to vector<128x128xbf16>
    %c8 = arith.constant 8 : index
    %c0_57 = arith.constant 0 : index
    %c0_58 = arith.constant 0 : index
    %80 = vector.load %arg3[%c8, %c0_57, %c0_58] : memref<9x128x128xbf16, #tpu.memory_space<vmem>>, vector<1x128x128xbf16>
    %81 = vector.shape_cast %80 : vector<1x128x128xbf16> to vector<128x128xbf16>
    %cst_59 = arith.constant dense<0.000000e+00> : vector<128x128xf32>
    %82 = tpu.matmul %79, %81, %cst_59 {dimension_numbers = #tpu.dot_dimension_numbers<[1], [0], [0], [1], [0, 0, 1, 1], [], []>} : vector<128x128xbf16>, vector<128x128xbf16>, vector<128x128xf32> -> vector<128x128xf32>
    %83 = arith.addf %74, %82 : vector<128x128xf32>
    %c0_60 = arith.constant 0 : index
    %c0_61 = arith.constant 0 : index
    %84 = vector.load %arg4[%c0_60, %c0_61] : memref<1x128xf32, #tpu.memory_space<vmem>>, vector<1x128xf32>
    %85 = vector.shape_cast %84 : vector<1x128xf32> to vector<128xf32>
    %86 = vector.shape_cast %85 : vector<128xf32> to vector<1x128xf32>
    %87 = vector.broadcast %86 : vector<1x128xf32> to vector<128x128xf32>
    %88 = arith.addf %83, %87 : vector<128x128xf32>
    %cst_62 = arith.constant 0.000000e+00 : f32
    %89 = vector.broadcast %cst_62 : f32 to vector<128x128xf32>
    %90 = arith.subf %89, %88 : vector<128x128xf32>
    %91 = math.exp %90 : vector<128x128xf32>
    %cst_63 = arith.constant 1.000000e+00 : f32
    %92 = vector.broadcast %cst_63 : f32 to vector<128x128xf32>
    %93 = arith.addf %92, %91 : vector<128x128xf32>
    %cst_64 = arith.constant 1.000000e+00 : f32
    %94 = vector.broadcast %cst_64 : f32 to vector<128x128xf32>
    %95 = arith.divf %94, %93 : vector<128x128xf32>
    %96 = arith.mulf %88, %95 : vector<128x128xf32>
    %97 = vector.shape_cast %96 : vector<128x128xf32> to vector<1x8x16x128xf32>
    %98 = arith.truncf %97 : vector<1x8x16x128xf32> to vector<1x8x16x128xbf16>
    %c0_65 = arith.constant 0 : index
    %c0_66 = arith.constant 0 : index
    %c0_67 = arith.constant 0 : index
    %c0_68 = arith.constant 0 : index
    %99 = vector.load %arg5[%c0_65, %c0_66, %c0_67, %c0_68] : memref<1x8x16x128xbf16, #tpu.memory_space<vmem>>, vector<1x8x16x128xbf16>
    tpu.vector_store %arg5[%c0_65, %c0_66, %c0_67, %c0_68], %98 {strides = array<i32>} : memref<1x8x16x128xbf16, #tpu.memory_space<vmem>>, vector<1x8x16x128xbf16>,
    return
  }
  func.func @transform_0(%arg0: i32, %arg1: i32) -> (i32, i32, i32, i32) {
    %c0_i32 = arith.constant 0 : i32
    %c0_i32_0 = arith.constant 0 : i32
    %c0_i32_1 = arith.constant 0 : i32
    %c0_i32_2 = arith.constant 0 : i32
    return %arg0, %c0_i32, %c0_i32_0, %c0_i32_1 : i32, i32, i32, i32
  }
  func.func @transform_1(%arg0: i32, %arg1: i32) -> (i32, i32, i32) {
    %c0_i32 = arith.constant 0 : i32
    %c0_i32_0 = arith.constant 0 : i32
    %c0_i32_1 = arith.constant 0 : i32
    %c0_i32_2 = arith.constant 0 : i32
    return %c0_i32, %c0_i32_0, %c0_i32_1 : i32, i32, i32
  }
  func.func @transform_2(%arg0: i32, %arg1: i32) -> (i32, i32) {
    %c0_i32 = arith.constant 0 : i32
    %c0_i32_0 = arith.constant 0 : i32
    %c0_i32_1 = arith.constant 0 : i32
    return %c0_i32, %c0_i32_0 : i32, i32
  }
  func.func @transform_3(%arg0: i32, %arg1: i32) -> (i32, i32, i32, i32) {
    %c0_i32 = arith.constant 0 : i32
    %c0_i32_0 = arith.constant 0 : i32
    %c0_i32_1 = arith.constant 0 : i32
    return %arg0, %arg1, %c0_i32, %c0_i32_0 : i32, i32, i32, i32
  }
}

</mosaic_0001>

<bundles_post_ra>
// kernel: tpu_custom_call.1
= control target key start
LH: loop header
LB: loop body
LE: loop exit
PB: predicated region body
PF: predicated region fallthrough
CT: control target
= control target key end

     0   :  { %8 = vsyncpa [#allocation3], 0  ;;  %s6030_s0 = inlined_call_operand.vmem [shape: bf16[2,18,18,128], index: 0, kind: input, shape index: {}]   ;;  %s6031_s1 = inlined_call_operand.vmem [shape: bf16[9,128,128], index: 1, kind: input, shape index: {}]   ;;  %s6032_s2 = inlined_call_operand.vmem [shape: f32[1,128], index: 2, kind: input, shape index: {}]   ;;  %s6033_s3 = inlined_call_operand.hbm [shape: bf16[2,16,16,128], index: 3, kind: output, shape index: {}]  }
   0x1   :  { %10 = vsyncpa [#allocation3 + $0x1], 0  ;;  %s4790_s12 = smov 0   ;;  %s4792_s13 = smov 0  }
   0x2   :  { %s4794_s14 = smov 0   ;;  %s4796_s15 = smov 0  }
   0x3   :  { %s4798_s16 = smov 0   ;;  %s4800_s17 = smov 0  }
   0x4   :  { %s4802_s18 = smov 0   ;;  %s4804_s19 = smov 0  }
   0x5 LB: > { %s3362_s20 = sadd.s32 4294967295, %s4765_s19   ;;  %s3363_s21 = sadd.s32 4294967294, %s4765_s19   ;;  %s4765_s19 = sphi %s4804_s19, %s16_s19   ;;  %s4761_s18 = sphi %s4802_s18, %s6055_s18   ;;  %s4757_s17 = sphi %s4800_s17, %s6054_s17   ;;  %s4753_s16 = sphi %s4798_s16, %s6053_s16   ;;  %s4749_s15 = sphi %s4796_s15, %s6052_s15   ;;  %s4745_s14 = sphi %s4794_s14, %s6051_s14   ;;  %s4741_s13 = sphi %s4792_s13, %s6050_s13   ;;  %s4737_s12 = sphi %s4790_s12, %s6049_s12  }
   0x6   : > { %s25_s22 = sadd.s32 1, %s4757_s17  ;;  %s28_s23 = sadd.s32 1, %s4761_s18 }
   0x7   : > { %p26_p0 = scmp.ge.s32.totalorder %s25_s22, 2  ;;  %p115_p1 = scmp.ne.s32.totalorder %s4745_s14, %s4741_s13 }
   0x8   : > { %p116_p2 = scmp.eq.s32.totalorder %s3362_s20, 3  ;;  %p121_p5 = scmp.ne.s32.totalorder %s4741_s13, %s4737_s12 }
   0x9   : > { %s6057_s22 = smov (%p26_p0, %s25_s22), 0  ;;  %s6059_s23 = smov (!%p26_p0, %s28_s23), %s4761_s18 }
   0xa   : > { %s101_s24 = ssub.s32 %s4757_s17, %s6057_s22  ;;  %p4841_p3 = por %p116_p2, %p115_p1 }
   0xb   : > { %p30_p4 = scmp.ge.s32.totalorder %s6059_s23, 2  ;;  %p122_p6 = scmp.eq.s32.totalorder %s3363_s21, 3 }
   0xc   : > { %p3366_p7 = scmp.ge.s32.totalorder %s4765_s19, 1  ;;  %p154_p9 = scmp.lt.s32.totalorder %s4765_s19, 5 }
   0xd   : > { %s6061_s23 = smov (%p30_p4, %s6059_s23), 0  ;;  %p4850_p8 = por %p122_p6, %p121_p5 }
   0xe   : > { %s100_s27 = ssub.s32 %s4761_s18, %s6061_s23  ;;  %s105_s28 = sadd.s32 1, %s4745_s14 }
   0xf   : > { %s102_s29 = sor.u32 %s101_s24, %s100_s27  ;;  %p155_p10 = pnand %p3366_p7, %p154_p9 }
  0x10   : > { %p103_p11 = scmp.eq.s32.totalorder %s102_s29, 0 }
  0x11   : > { %158 = sbr.rel (%p155_p10) target bundleno = 497 (0x1f1), region = 32 }
  0x12   : > { %s4859_s30 = scalar_select %p103_p11, %s4745_s14, %s105_s28  }
  0x18   : > { %v4507_v0 = vld [vmem:[%s6031_s1 + $0x40] sm:$0xff]   ;;  %p178_p12 = scmp.lt.s32.totalorder %s4753_s16, 1  ;;  %v4509_v2 = vld [vmem:[%s6031_s1 + $0x48] sm:$0xff]   ;;  %v4511_v4 = vld [vmem:[%s6031_s1 + $0x50] sm:$0xff]   ;;  %s3792_s8 = smul.u32 96, %s4749_s15  ;;  %vm835_vm3 = vcmask 1042432  }
  0x19   : > { %v4508_v1 = vld [vmem:[%s6031_s1 + $0x100] sm:$0xff]   ;;  %4001 = vmatprep.subr.bf16.mxu1 %v4507_v0  ;;  %v4510_v3 = vld [vmem:[%s6031_s1 + $0x108] sm:$0xff]   ;;  %v4512_v5 = vld [vmem:[%s6031_s1 + $0x110] sm:$0xff]   ;;  %vm229_vm0 = vsmask.f32 3328  ;;  %vm836_vm4 = vcmask 1046532  }
  0x1a   : > { %s179_s10 = scalar_select %p178_p12, %s4753_s16, 1  ;;  %4129 = vmatprep.subr.bf16.mxu0 %v4508_v1  ;;  %4002 = vmatpush3.bf16.msra.mxu1 %v4507_v0  ;;  %v4513_v6 = vld [vmem:[%s6031_s1 + $0x58] sm:$0xff]   ;;  %v4515_v8 = vld [vmem:[%s6031_s1 + $0x60] sm:$0xff]   ;;  %v4517_v10 = vld [vmem:[%s6031_s1 + $0x68] sm:$0xff]   ;;  %vm230_vm1 = vsmask.f32 7440 }
  0x1b   : > { %4130 = vmatpush3.bf16.msra.mxu0 %v4508_v1  ;;  %4003 = vmatprep.subr.bf16.mxu1 %v4509_v2  ;;  %v4514_v7 = vld [vmem:[%s6031_s1 + $0x118] sm:$0xff]   ;;  %v4516_v9 = vld [vmem:[%s6031_s1 + $0x120] sm:$0xff]   ;;  %v4518_v11 = vld [vmem:[%s6031_s1 + $0x128] sm:$0xff]   ;;  %s3809_s24 = sshll.u32 %s4749_s15, 4  ;;  %s3788_s27 = sshll.u32 %s4753_s16, 5 }
  0x1c   : > { %4131 = vmatprep.subr.bf16.mxu0 %v4510_v3  ;;  %s4433_s29 = smul.u32 216, %s179_s10  ;;  %v4519_v25 = vld [vmem:[%s6031_s1 + $0x70] sm:$0xff]   ;;  %v4521_v35 = vld [vmem:[%s6031_s1 + $0x78] sm:$0xff]   ;;  %vm4942_vm2 = vmor %vm229_vm0, %vm230_vm1  ;;  %s3273_s4 = sadd.s32 %s3809_s24, %s3788_s27 }
  0x1d   : > { %v4520_v29 = vld [vmem:[%s6031_s1 + $0x130] sm:$0xff]   ;;  %v4522_v50 = vld [vmem:[%s6031_s1 + $0x138] sm:$0xff]   ;;  %vm5239_vm5 = vmor %vm835_vm3, %vm836_vm4  ;;  %s3789_s15 = sshll.u32 %s3273_s4, 6  ;;  %s4767_s9 = smov [#allocation2]  }
  0x1e   : > { %4004 = vmatpush3.bf16.msra.mxu1 %v4509_v2  ;;  %s182_s20 = scalar_lea.vmem %s6030_s0, %s4433_s29  ;;  %v4523_v2 = vld [vmem:[%s6031_s1] sm:$0xff]   ;;  %s5969_s6 = scalar_lea.hbm %s6033_s3, %s3789_s15 }
  0x1f   : > { %4132 = vmatpush3.bf16.msra.mxu0 %v4510_v3  ;;  %4005 = vmatprep.subr.bf16.mxu1 %v4511_v4  ;;  %s4897_s28 = scalar_lea.vmem %s182_s20, %s3792_s8  ;;  %v4974_v3 = vld [vmem:[%s6031_s1 + $0x140] sm:$0xff]   ;;  %s175_s20 = sand.u32 1, %s4741_s13  }
  0x20   : > { %4133 = vmatprep.subr.bf16.mxu0 %v4512_v5  ;;  %v4906_v12 = vld [vmem:[%s4897_s28] sm:$0xf]  ;;  %v4909_v13 = vld [vmem:[%s4897_s28 + $0x4] sm:$0xf]  ;;  %v4912_v14 = vld [vmem:[%s4897_s28 + $0x8] sm:$0x1] }
  0x21   : > { %v233_v15 = vshrl.u32 %v4906_v12, 16  ;;  %v236_v16 = vshll.u32 %v4906_v12, 16  ;;  %v242_v17 = vshll.u32 %v4909_v13, 16  ;;  %v246_v18 = vshrl.u32 %v4909_v13, 16  ;;  %v3510_v20 = vld [vmem:[%s4897_s28 + $0xc] sm:$0xf] }
  0x22   : > { %4006 = vmatpush3.bf16.msra.mxu1 %v4511_v4  ;;  %v252_v19 = vshll.u32 %v4912_v14, 16  ;;  %v4921_v23 = vld [vmem:[%s4897_s28 + $0x10] sm:$0xf]  ;;  %v4924_v24 = vld [vmem:[%s4897_s28 + $0x14] sm:$0x1]  ;;  %v1375_v28 = vshrl.u32 %v3510_v20, 16 }
  0x23   : > { %4134 = vmatpush3.bf16.msra.mxu0 %v4512_v5  ;;  %4007 = vmatprep.subr.bf16.mxu1 %v4513_v6  ;;  %v235_v21 = vrot.slane %v233_v15, 4  ;;  %v238_v22 = vrot.slane %v236_v16, 5  ;;  %v244_v26 = vrot.slane %v242_v17, 5  ;;  %v248_v27 = vrot.slane %v246_v18, 4  ;;  %v4935_v34 = vld [vmem:[%s4897_s28 + $0xc] sm:$0xf] }
  0x24   : > { %4135 = vmatprep.subr.bf16.mxu0 %v4514_v7  ;;  %v1378_v31 = vshll.u32 %v3510_v20, 16  ;;  %v1384_v32 = vshll.u32 %v4921_v23, 16  ;;  %v1388_v33 = vshrl.u32 %v4921_v23, 16  ;;  %v254_v38 = vrot.slane %v252_v19, 5  ;;  %v4948_v41 = vld [vmem:[%s4897_s28 + $0x10] sm:$0xf] }
  0x25   : > { %v239_v30 = vor.u32 %v238_v22, %v235_v21  ;;  %v249_v37 = vor.u32 %v248_v27, %v244_v26  ;;  %v1377_v39 = vrot.slane %v1375_v28, 4  ;;  %v1394_v40 = vshll.u32 %v4924_v24, 16  ;;  %v4958_v54 = vld [vmem:[%s4897_s28 + $0x14] sm:$0x1]  ;;  %v3513_v56 = vld [vmem:[%s4897_s28 + $0x18] sm:$0xf] }
  0x26   : > { %4008 = vmatpush3.bf16.msra.mxu1 %v4513_v6  ;;  %v1380_v43 = vrot.slane %v1378_v31, 5  ;;  %v1386_v44 = vrot.slane %v1384_v32, 5  ;;  %v1390_v45 = vrot.slane %v1388_v33, 4  ;;  %v257_v48 = vshrl.u32 %v4935_v34, 16  ;;  %v4966_v61 = vld [vmem:[%s4897_s28 + $0x1c] sm:$0xf] }
  0x27   : > { %4136 = vmatpush3.bf16.msra.mxu0 %v4514_v7  ;;  %4009 = vmatprep.subr.bf16.mxu1 %v4515_v8  ;;  %v240_v42 = vrot.slane %v239_v30, 4  ;;  %v250_v46 = vrot.slane %v249_v37, 4  ;;  %v1396_v47 = vrot.slane %v1394_v40, 5  ;;  %v260_v49 = vshll.u32 %v4935_v34, 16  ;;  %v4978_v7 = vld [vmem:[%s4897_s28 + $0x20] sm:$0x1] }
  0x28   : > { %4137 = vmatprep.subr.bf16.mxu0 %v4516_v9  ;;  %v1381_v52 = vor.u32 %v1380_v43, %v1377_v39  ;;  %v1391_v53 = vor.u32 %v1390_v45, %v1386_v44  ;;  %v266_v55 = vshll.u32 %v4948_v41, 16  ;;  %v259_v58 = vrot.slane %v257_v48, 4  ;;  %v4995_v33 = vld [vmem:[%s4897_s28 + $0x1c] sm:$0xf]  ;;  %s3367_s10 = sshll.u32 %s175_s20, 6  ;;  %s5978_s7 = scalar_lea.sflag [#allocation3], %s175_s20 }
  0x29   : > { %v245_v51 = vsel %vm4942_vm2, %v240_v42, %v244_v26  ;;  %v255_v57 = vsel %vm4942_vm2, %v250_v46, %v254_v38  ;;  %v262_v59 = vrot.slane %v260_v49, 5  ;;  %v270_v60 = vshrl.u32 %v4948_v41, 16  ;;  %v3516_v42 = vld [vmem:[%s4897_s28 + $0x24] sm:$0xf]  ;;  %v4525_v46 = vld [vmem:[%s6031_s1 + $0x8] sm:$0xff]   ;;  %s5944_s21 = scalar_lea.vmem [#allocation2], %s3367_s10 }
  0x2a   : > { %4010 = vmatpush3.bf16.msra.mxu1 %v4515_v8  ;;  %v3388_v62 = vcombine.low %v245_v51, %v255_v57  ;;  %v1382_v63 = vrot.slane %v1381_v52, 4  ;;  %v1392_v0 = vrot.slane %v1391_v53, 4  ;;  %v268_v1 = vrot.slane %v266_v55, 5  ;;  %v5010_v52 = vld [vmem:[%s4897_s28 + $0x28] sm:$0xf]  ;;  %s3276_s16 = sshll.u32 %s5944_s21, 4  ;;  %s5971_s16 = int_to_ptr.vmem [resolvable:$true] %s3276_s16 }
  0x2b   : > { %4138 = vmatpush3.bf16.msra.mxu0 %v4516_v9  ;;  %4011 = vmatprep.subr.bf16.mxu1 %v4517_v10  ;;  %v263_v4 = vor.u32 %v262_v59, %v259_v58  ;;  %v272_v5 = vrot.slane %v270_v60, 4  ;;  %v276_v6 = vshll.u32 %v4958_v54, 16  ;;  %v1408_v21 = vshll.u32 %v4966_v61, 16  ;;  %v5015_v57 = vld [vmem:[%s4897_s28 + $0x2c] sm:$0x1]  ;;  %v4527_v59 = vld [vmem:[%s6031_s1 + $0x10] sm:$0xff]  }
  0x2c   : > { %4139 = vmatprep.subr.bf16.mxu0 %v4518_v11  ;;  %4017 = vmatprep.mubr.bf16.mxu1 %v3388_v62  ;;  %v1387_v8 = vsel %vm4942_vm2, %v1382_v63, %v1386_v44  ;;  %v1397_v9 = vsel %vm4942_vm2, %v1392_v0, %v1396_v47  ;;  %v1412_v22 = vshrl.u32 %v4966_v61, 16  ;;  %v290_v49 = vshll.u32 %v4995_v33, 16  ;;  %v4526_v60 = vld [vmem:[%s6031_s1 + $0x148] sm:$0xff]   ;;  %s4671_s8 = scalar_lea.vmem %s5971_s16, 1024 }
  0x2d   : > { %v3550_v15 = vcombine.low %v1387_v8, %v1397_v9  ;;  %v264_v16 = vrot.slane %v263_v4, 4  ;;  %v273_v17 = vor.u32 %v272_v5, %v268_v1  ;;  %v278_v18 = vrot.slane %v276_v6, 5  ;;  %v5024_v4 = vld [vmem:[%s4897_s28 + $0x24] sm:$0xf]  ;;  %p4672_p13 = scmp.ne.s32.totalorder %s5971_s16, %s4671_s8 }
  0x2e   : > { %4012 = vmatpush3.bf16.msra.mxu1 %v4517_v10  ;;  %v1399_v10 = vshrl.u32 %v3513_v56, 16  ;;  %v1410_v31 = vrot.slane %v1408_v21, 5  ;;  %v1414_v32 = vrot.slane %v1412_v22, 4  ;;  %v1423_v58 = vshrl.u32 %v3516_v42, 16  ;;  %v3519_v22 = vld [vmem:[%s4897_s28 + $0x30] sm:$0xf] }
  0x2f   : > { %4140 = vmatpush3.bf16.msra.mxu0 %v4518_v11  ;;  %4013 = vmatprep.subr.bf16.mxu1 %v4519_v25  ;;  %v1402_v11 = vshll.u32 %v3513_v56, 16  ;;  %v269_v27 = vsel %vm4942_vm2, %v264_v16, %v268_v1  ;;  %v274_v28 = vrot.slane %v273_v17, 4  ;;  %v292_v62 = vrot.slane %v290_v49, 5  ;;  %v5031_v16 = vld [vmem:[%s4897_s28 + $0x28] sm:$0xf]  ;;  %p4673_p0 = pnand %p4672_p13, %p4841_p3 }
  0x30   : > { %4141 = vmatprep.subr.bf16.mxu0 %v4520_v29  ;;  %v1401_v19 = vrot.slane %v1399_v10, 4  ;;  %4145 = vmatprep.mubr.bf16.mxu0 %v3550_v15  ;;  %v1415_v45 = vor.u32 %v1414_v32, %v1410_v31  ;;  %v1426_v1 = vshll.u32 %v3516_v42, 16  ;;  %v1425_v8 = vrot.slane %v1423_v58, 4  ;;  %v5034_v17 = vld [vmem:[%s4897_s28 + $0x2c] sm:$0x1]  ;;  %v4528_v32 = vld [vmem:[%s6031_s1 + $0x150] sm:$0xff]  }
  0x31   : > { %v1404_v20 = vrot.slane %v1402_v11, 5  ;;  %v279_v37 = vsel %vm4942_vm2, %v274_v28, %v278_v18  ;;  %v1436_v15 = vshrl.u32 %v5010_v52, 16  ;;  %v305_v21 = vshrl.u32 %v5024_v4, 16  ;;  %v4529_v42 = vld [vmem:[%s6031_s1 + $0x18] sm:$0xff]   ;;  %p4674_p1 = pneg %p4673_p0 }
  0x32   : > { %4014 = vmatpush3.bf16.msra.mxu1 %v4519_v25  ;;  %v4987_v25 = vld [vmem:[%s4897_s28 + $0x18] sm:$0xf]  ;;  %v3389_v43 = vcombine.low %v269_v27, %v279_v37  ;;  %v1416_v55 = vrot.slane %v1415_v45, 4  ;;  %v1428_v11 = vrot.slane %v1426_v1, 5  ;;  %v324_v49 = vshll.u32 %v5034_v17, 16 }
  0x33   : > { %4142 = vmatpush3.bf16.msra.mxu0 %v4520_v29  ;;  %4015 = vmatprep.subr.bf16.mxu1 %v4521_v35  ;;  %v1418_v29 = vshll.u32 %v4978_v7, 16  ;;  %v1405_v30 = vor.u32 %v1404_v20, %v1401_v19  ;;  %v281_v40 = vshrl.u32 %v4987_v25, 16  ;;  %v284_v47 = vshll.u32 %v4987_v25, 16  ;;  %v4530_v58 = vld [vmem:[%s6031_s1 + $0x158] sm:$0xff]  }
  0x34   : > { %4143 = vmatprep.subr.bf16.mxu0 %v4522_v50  ;;  %v1442_v20 = vshll.u32 %v5015_v57, 16  ;;  %v1429_v28 = vor.u32 %v1428_v11, %v1425_v8 }
  0x35   : > { %v1420_v38 = vrot.slane %v1418_v29, 5  ;;  %v1406_v44 = vrot.slane %v1405_v30, 4  ;;  %v283_v48 = vrot.slane %v281_v40, 4  ;;  %v286_v56 = vrot.slane %v284_v47, 5 }
  0x36   : > { %4016 = vmatpush3.bf16.msra.mxu1 %v4521_v35  ;;  %v223_v35 = vld [vmem:[%s4897_s28 + $0x20] sm:$0x1]  ;;  %v1438_v29 = vrot.slane %v1436_v15, 4  ;;  %v308_v30 = vshll.u32 %v5024_v4, 16  ;;  %v1444_v37 = vrot.slane %v1442_v20, 5  ;;  %v314_v40 = vshll.u32 %v5031_v16, 16 }
  0x37   : > { %4144 = vmatpush3.bf16.msra.mxu0 %v4522_v50  ;;  %4033 = vmatprep.subr.bf16.mxu1 %v4523_v2  ;;  %v294_v50 = vshrl.u32 %v4995_v33, 16  ;;  %v300_v51 = vshll.u32 %v223_v35, 16  ;;  %v1411_v53 = vsel %vm4942_vm2, %v1406_v44, %v1410_v31  ;;  %v1421_v5 = vsel %vm4942_vm2, %v1416_v55, %v1420_v38  ;;  %v5041_v31 = vld [vmem:[%s4897_s28 + $0x34] sm:$0xf]  ;;  %v5060_v55 = vld [vmem:[%s4897_s28 + $0x38] sm:$0x1] }
  0x38   : > { %4161 = vmatprep.subr.bf16.mxu0 %v4974_v3  ;;  %v287_v6 = vor.u32 %v286_v56, %v283_v48  ;;  %v3551_v9 = vcombine.low %v1411_v53, %v1421_v5  ;;  %v307_v38 = vrot.slane %v305_v21, 4  ;;  %v1430_v44 = vrot.slane %v1429_v28, 4  ;;  %v5067_v5 = vld [vmem:[%s4897_s28 + $0x30] sm:$0xf] }
  0x39   : > { %4018 = vmatmul.mubr.bf16.vlgmr.msra.gmra.mrb[0].mxu1 %v3389_v43  ;;  %v296_v63 = vrot.slane %v294_v50, 4  ;;  %v302_v0 = vrot.slane %v300_v51, 5  ;;  %v316_v47 = vrot.slane %v314_v40, 5  ;;  %v318_v48 = vshrl.u32 %v5031_v16, 16 }
  0x3a   : > { %4034 = vmatpush3.bf16.msra.mxu1 %v4523_v2  ;;  %v1432_v2 = vshll.u32 %v5010_v52, 16  ;;  %v288_v18 = vrot.slane %v287_v6, 4  ;;  %4146 = vmatmul.mubr.bf16.vlgmr.msra.gmra.mrb[0].mxu0 %v3551_v9  ;;  %v1447_v56 = vshrl.u32 %v3519_v22, 16  ;;  %v1456_v1 = vshll.u32 %v5041_v31, 16  ;;  %v5073_v9 = vld [vmem:[%s4897_s28 + $0x34] sm:$0xf] }
  0x3b   : > { %4035 = vmatprep.subr.bf16.mxu1 %v4525_v46  ;;  %v297_v10 = vor.u32 %v296_v63, %v292_v62  ;;  %4162 = vmatpush3.bf16.msra.mxu0 %v4974_v3  ;;  %v310_v3 = vrot.slane %v308_v30, 5  ;;  %v326_v63 = vrot.slane %v324_v49, 5  ;;  %v1466_v21 = vshll.u32 %v5060_v55, 16 }
  0x3c   : > { %v1434_v19 = vrot.slane %v1432_v2, 5  ;;  %v293_v35 = vsel %vm4942_vm2, %v288_v18, %v292_v62  ;;  %4163 = vmatprep.subr.bf16.mxu0 %v4526_v60  ;;  %v320_v62 = vrot.slane %v318_v48, 4  ;;  %v1449_v2 = vrot.slane %v1447_v56, 4  ;;  %v5098_v48 = vld [vmem:[%s4897_s28 + $0x40] sm:$0xf]  ;;  %v4535_v56 = vld [vmem:[%s6031_s1 + $0x30] sm:$0xff]  }
  0x3d   : > { %v298_v27 = vrot.slane %v297_v10, 4  ;;  %v311_v53 = vor.u32 %v310_v3, %v307_v38  ;;  %v1458_v18 = vrot.slane %v1456_v1, 5  ;;  %v332_v30 = vshll.u32 %v5067_v5, 16 }
  0x3e   : > { %4036 = vmatpush3.bf16.msra.mxu1 %v4525_v46  ;;  %v1439_v45 = vor.u32 %v1438_v29, %v1434_v19  ;;  %v1435_v50 = vsel %vm4942_vm2, %v1430_v44, %v1434_v19  ;;  %v321_v11 = vor.u32 %v320_v62, %v316_v47  ;;  %v5083_v29 = vld [vmem:[%s4897_s28 + $0x38] sm:$0x1]  ;;  %v1468_v40 = vrot.slane %v1466_v21, 5  ;;  %v3522_v44 = vld [vmem:[%s4897_s28 + $0x3c] sm:$0xf] }
  0x3f   : > { %4037 = vmatprep.subr.bf16.mxu1 %v4527_v59  ;;  %v303_v43 = vsel %vm4942_vm2, %v298_v27, %v302_v0  ;;  %4164 = vmatpush3.bf16.msra.mxu0 %v4526_v60  ;;  %v1450_v0 = vshll.u32 %v3519_v22, 16  ;;  %v312_v8 = vrot.slane %v311_v53, 4  ;;  %v4531_v60 = vld [vmem:[%s6031_s1 + $0x20] sm:$0xff]   ;;  %v329_v22 = vshrl.u32 %v5067_v5, 16 }
  0x40   : > { %v3390_v46 = vcombine.low %v293_v35, %v303_v43  ;;  %v1440_v51 = vrot.slane %v1439_v45, 4  ;;  %4165 = vmatprep.subr.bf16.mxu0 %v4528_v32  ;;  %v322_v27 = vrot.slane %v321_v11, 4  ;;  %v338_v35 = vshll.u32 %v5073_v9, 16  ;;  %v5119_v11 = vld [vmem:[%s4897_s28 + $0x40] sm:$0xf] }
  0x41   : > { %v1452_v15 = vrot.slane %v1450_v0, 5  ;;  %v317_v19 = vsel %vm4942_vm2, %v312_v8, %v316_v47  ;;  %v342_v43 = vshrl.u32 %v5073_v9, 16  ;;  %v348_v53 = vshll.u32 %v5083_v29, 16  ;;  %v5107_v0 = vld [vmem:[%s4897_s28 + $0x44] sm:$0x1]  ;;  %v4534_v8 = vld [vmem:[%s6031_s1 + $0x168] sm:$0xff]  }
  0x42   : > { %4038 = vmatpush3.bf16.msra.mxu1 %v4527_v59  ;;  %4021 = vmatprep.mubr.bf16.mxu1 %v3390_v46  ;;  %v1445_v6 = vsel %vm4942_vm2, %v1440_v51, %v1444_v37  ;;  %v1460_v59 = vshrl.u32 %v5041_v31, 16  ;;  %v4533_v37 = vld [vmem:[%s6031_s1 + $0x28] sm:$0xff]   ;;  %v327_v45 = vsel %vm4942_vm2, %v322_v27, %v326_v63  ;;  %v334_v46 = vrot.slane %v332_v30, 5  ;;  %v5122_v21 = vld [vmem:[%s4897_s28 + $0x44] sm:$0x1] }
  0x43   : > { %4039 = vmatprep.subr.bf16.mxu1 %v4529_v42  ;;  %v3552_v10 = vcombine.low %v1435_v50, %v1445_v6  ;;  %v1453_v28 = vor.u32 %v1452_v15, %v1449_v2  ;;  %4166 = vmatpush3.bf16.msra.mxu0 %v4528_v32  ;;  %v4532_v32 = vld [vmem:[%s6031_s1 + $0x160] sm:$0xff]   ;;  %v340_v47 = vrot.slane %v338_v35, 5  ;;  %v3391_v49 = vcombine.low %v317_v19, %v327_v45  ;;  %v5135_v45 = vld [vmem:[%s4897_s28 + $0x4c] sm:$0xf] }
  0x44   : > { %v1462_v20 = vrot.slane %v1460_v59, 4  ;;  %4167 = vmatprep.subr.bf16.mxu0 %v4530_v58  ;;  %v344_v51 = vrot.slane %v342_v43, 4  ;;  %v1471_v1 = vshrl.u32 %v3522_v44, 16  ;;  %v1474_v6 = vshll.u32 %v3522_v44, 16  ;;  %6040 = vst [vmem:[#allocation5_spill] sm:$0xff] %v5122_v21 }
  0x45   : > { %4149 = vmatprep.mubr.bf16.mxu0 %v3552_v10  ;;  %v1454_v3 = vrot.slane %v1453_v28, 4  ;;  %4022 = vmatmul.mubr.bf16.gmra.mrb[4].mxu1 %v3391_v49  ;;  %v5116_v10 = vld [vmem:[%s4897_s28 + $0x3c] sm:$0xf]  ;;  %v1484_v30 = vshrl.u32 %v5098_v48, 16  ;;  %v1490_v35 = vshll.u32 %v5107_v0, 16 }
  0x46   : > { %4040 = vmatpush3.bf16.msra.mxu1 %v4529_v42  ;;  %v1463_v38 = vor.u32 %v1462_v20, %v1458_v18  ;;  %v331_v42 = vrot.slane %v329_v22, 4  ;;  %v345_v59 = vor.u32 %v344_v51, %v340_v47  ;;  %v1473_v19 = vrot.slane %v1471_v1, 4  ;;  %v4537_v22 = vld [vmem:[%s6031_s1 + $0x38] sm:$0xff]  }
  0x47   : > { %4041 = vmatprep.subr.bf16.mxu1 %v4531_v60  ;;  %v1459_v62 = vsel %vm4942_vm2, %v1454_v3, %v1458_v18  ;;  %4168 = vmatpush3.bf16.msra.mxu0 %v4530_v58  ;;  %v1480_v58 = vshll.u32 %v5098_v48, 16  ;;  %v1476_v20 = vrot.slane %v1474_v6, 5  ;;  %v353_v43 = vshrl.u32 %v5116_v10, 16 }
  0x48   : > { %v1464_v50 = vrot.slane %v1463_v38, 4  ;;  %v335_v63 = vor.u32 %v334_v46, %v331_v42  ;;  %4169 = vmatprep.subr.bf16.mxu0 %v4532_v32  ;;  %v346_v27 = vrot.slane %v345_v59, 4  ;;  %v3525_v38 = vld [vmem:[%s4897_s28 + $0x48] sm:$0xf]  ;;  %v356_v44 = vshll.u32 %v5116_v10, 16 }
  0x49   : > { %v1482_v28 = vrot.slane %v1480_v58, 5  ;;  %v1477_v42 = vor.u32 %v1476_v20, %v1473_v19  ;;  %v1486_v46 = vrot.slane %v1484_v30, 4  ;;  %v1492_v49 = vrot.slane %v1490_v35, 5 }
  0x4a   : > { %4042 = vmatpush3.bf16.msra.mxu1 %v4531_v60  ;;  %v1469_v2 = vsel %vm4942_vm2, %v1464_v50, %v1468_v40  ;;  %v350_v60 = vrot.slane %v348_v53, 5  ;;  %v336_v18 = vrot.slane %v335_v63, 4  ;;  %v362_v50 = vshll.u32 %v5119_v11, 16 }
  0x4b   : > { %4043 = vmatprep.subr.bf16.mxu1 %v4533_v37  ;;  %v3553_v15 = vcombine.low %v1459_v62, %v1469_v2  ;;  %4170 = vmatpush3.bf16.msra.mxu0 %v4532_v32  ;;  %v1478_v51 = vrot.slane %v1477_v42, 4  ;;  %v358_v53 = vrot.slane %v356_v44, 5  ;;  %v4536_v62 = vld [vmem:[%s6031_s1 + $0x170] sm:$0xff]   ;;  %v1487_v63 = vor.u32 %v1486_v46, %v1482_v28  ;;  %v5161_v42 = vld [vmem:[%s4897_s28 + $0x48] sm:$0xf] }
  0x4c   : > { %v341_v40 = vsel %vm4942_vm2, %v336_v18, %v340_v47  ;;  %v351_v3 = vsel %vm4942_vm2, %v346_v27, %v350_v60  ;;  %v355_v47 = vrot.slane %v353_v43, 4  ;;  %4171 = vmatprep.subr.bf16.mxu0 %v4534_v8  ;;  %v364_v1 = vrot.slane %v362_v50, 5  ;;  %v5148_v60 = vld [vmem:[%s4897_s28 + $0x50] sm:$0x1]  ;;  %v5153_v18 = vld [vmem:[%s6031_s1 + $0x80] sm:$0xff]  }
  0x4d   : > { %4150 = vmatmul.mubr.bf16.gmra.mrb[4].mxu0 %v3553_v15  ;;  %v366_v6 = vshrl.u32 %v5119_v11, 16  ;;  %v372_v2 = vshll.u32 %v5122_v21, 16  ;;  %v1483_v32 = vsel %vm4942_vm2, %v1478_v51, %v1482_v28  ;;  %v1495_v58 = vshrl.u32 %v3525_v38, 16  ;;  %v4538_v28 = vld [vmem:[%s6031_s1 + $0x178] sm:$0xff]   ;;  %v5167_v46 = vld [vmem:[%s4897_s28 + $0x4c] sm:$0xf] }
  0x4e   : > { %4044 = vmatpush3.bf16.msra.mxu1 %v4533_v37  ;;  %v3392_v37 = vcombine.low %v341_v40, %v351_v3  ;;  %v359_v59 = vor.u32 %v358_v53, %v355_v47  ;;  %v1498_v15 = vshll.u32 %v3525_v38, 16  ;;  %v1488_v19 = vrot.slane %v1487_v63, 4  ;;  %v5172_v53 = vld [vmem:[%s4897_s28 + $0x50] sm:$0x1]  ;;  %v3528_v63 = vld [vmem:[%s4897_s28 + $0x54] sm:$0xf] }
  0x4f   : > { %4045 = vmatprep.subr.bf16.mxu1 %v4535_v56  ;;  %v368_v20 = vrot.slane %v366_v6, 4  ;;  %v1504_v27 = vshll.u32 %v5135_v45, 16  ;;  %4172 = vmatpush3.bf16.msra.mxu0 %v4534_v8  ;;  %v1497_v35 = vrot.slane %v1495_v58, 4  ;;  %v1508_v40 = vshrl.u32 %v5135_v45, 16  ;;  %6041 = vst [vmem:[#allocation6_spill] sm:$0xff] %v5172_v53 }
  0x50   : > { %4025 = vmatprep.mubr.bf16.mxu1 %v3392_v37  ;;  %v360_v30 = vrot.slane %v359_v59, 4  ;;  %v1500_v38 = vrot.slane %v1498_v15, 5  ;;  %4173 = vmatprep.subr.bf16.mxu0 %v4536_v62  ;;  %v1493_v43 = vsel %vm4942_vm2, %v1488_v19, %v1492_v49  ;;  %v1514_v8 = vshll.u32 %v5148_v60, 16  ;;  %v5183_v15 = vld [vmem:[%s6031_s1 + $0x180] sm:$0xff]  }
  0x51   : > { %v369_v44 = vor.u32 %v368_v20, %v364_v1  ;;  %v1506_v3 = vrot.slane %v1504_v27, 5  ;;  %v3554_v50 = vcombine.low %v1483_v32, %v1493_v43  ;;  %v1510_v47 = vrot.slane %v1508_v40, 4 }
  0x52   : > { %4046 = vmatpush3.bf16.msra.mxu1 %v4535_v56  ;;  %v374_v56 = vrot.slane %v372_v2, 5  ;;  %v365_v37 = vsel %vm4942_vm2, %v360_v30, %v364_v1  ;;  %v1501_v51 = vor.u32 %v1500_v38, %v1497_v35  ;;  %v1516_v49 = vrot.slane %v1514_v8, 5  ;;  %v5189_v30 = vld [vmem:[%s4897_s28 + $0x58] sm:$0xf]  ;;  %v5197_v8 = vld [vmem:[%s4897_s28 + $0x54] sm:$0xf] }
  0x53   : > { %4047 = vmatprep.subr.bf16.mxu1 %v4537_v22  ;;  %v370_v6 = vrot.slane %v369_v44, 4  ;;  %v377_v2 = vshrl.u32 %v5161_v42, 16  ;;  %v380_v59 = vshll.u32 %v5161_v42, 16  ;;  %4174 = vmatpush3.bf16.msra.mxu0 %v4536_v62  ;;  %v1511_v1 = vor.u32 %v1510_v47, %v1506_v3  ;;  %v5194_v44 = vld [vmem:[%s4897_s28 + $0x5c] sm:$0x1] }
  0x54   : > { %4153 = vmatprep.mubr.bf16.mxu0 %v3554_v50  ;;  %v386_v32 = vshll.u32 %v5167_v46, 16  ;;  %v390_v58 = vshrl.u32 %v5167_v46, 16  ;;  %4175 = vmatprep.subr.bf16.mxu0 %v4538_v28  ;;  %v396_v27 = vshll.u32 %v5172_v53, 16  ;;  %v5224_v53 = vld [vmem:[%s4897_s28 + $0x68] sm:$0x1] }
  0x55   : > { %v375_v19 = vsel %vm4942_vm2, %v370_v6, %v374_v56  ;;  %v379_v62 = vrot.slane %v377_v2, 4  ;;  %v382_v20 = vrot.slane %v380_v59, 5  ;;  %v1512_v40 = vrot.slane %v1511_v1, 4  ;;  %v5200_v6 = vld [vmem:[%s4897_s28 + $0x58] sm:$0xf] }
  0x56   : > { %4048 = vmatpush3.bf16.msra.mxu1 %v4537_v22  ;;  %v1502_v22 = vrot.slane %v1501_v51, 4  ;;  %v3393_v35 = vcombine.low %v365_v37, %v375_v19  ;;  %v388_v43 = vrot.slane %v386_v32, 5  ;;  %v392_v51 = vrot.slane %v390_v58, 4 }
  0x57   : > { %4065 = vmatprep.subr.bf16.mxu1 %v5153_v18  ;;  %v383_v50 = vor.u32 %v382_v20, %v379_v62  ;;  %v398_v47 = vrot.slane %v396_v27, 5  ;;  %v1519_v56 = vshrl.u32 %v3528_v63, 16  ;;  %4176 = vmatpush3.bf16.msra.mxu0 %v4538_v28  ;;  %v1517_v37 = vsel %vm4942_vm2, %v1512_v40, %v1516_v49  ;;  %v5209_v20 = vld [vmem:[%s4897_s28 + $0x5c] sm:$0x1] }
  0x58   : > { %v1507_v38 = vsel %vm4942_vm2, %v1502_v22, %v1506_v3  ;;  %4026 = vmatmul.mubr.bf16.gmra.mrb[8].mxu1 %v3393_v35  ;;  %v1522_v3 = vshll.u32 %v3528_v63, 16  ;;  %v1528_v2 = vshll.u32 %v5189_v30, 16  ;;  %v1532_v59 = vshrl.u32 %v5189_v30, 16  ;;  %4193 = vmatprep.subr.bf16.mxu0 %v5183_v15  ;;  %v3531_v63 = vld [vmem:[%s4897_s28 + $0x60] sm:$0xf] }
  0x59   : > { %v3555_v22 = vcombine.low %v1507_v38, %v1517_v37  ;;  %v384_v1 = vrot.slane %v383_v50, 4  ;;  %v393_v32 = vor.u32 %v392_v51, %v388_v43  ;;  %v1521_v58 = vrot.slane %v1519_v56, 4 }
  0x5a   : > { %v1524_v28 = vrot.slane %v1522_v3, 5  ;;  %v1530_v19 = vrot.slane %v1528_v2, 5  ;;  %v1534_v62 = vrot.slane %v1532_v59, 4  ;;  %v1538_v49 = vshll.u32 %v5194_v44, 16  ;;  %v5218_v3 = vld [vmem:[%s4897_s28 + $0x64] sm:$0xf] }
  0x5b   : > { %4154 = vmatmul.mubr.bf16.gmra.mrb[8].mxu0 %v3555_v22  ;;  %v389_v27 = vsel %vm4942_vm2, %v384_v1, %v388_v43  ;;  %v394_v35 = vrot.slane %v393_v32, 4  ;;  %v401_v38 = vshrl.u32 %v5197_v8, 16  ;;  %v404_v40 = vshll.u32 %v5197_v8, 16 }
  0x5c   : > { %v1525_v50 = vor.u32 %v1524_v28, %v1521_v58  ;;  %v1535_v51 = vor.u32 %v1534_v62, %v1530_v19  ;;  %v1540_v56 = vrot.slane %v1538_v49, 5  ;;  %v410_v37 = vshll.u32 %v5200_v6, 16  ;;  %v3566_v58 = vld [vmem:[%s4897_s28 + $0xc] sm:$0xe] }
  0x5d   : > { %v399_v2 = vsel %vm4942_vm2, %v394_v35, %v398_v47  ;;  %v403_v59 = vrot.slane %v401_v38, 4  ;;  %v406_v22 = vrot.slane %v404_v40, 5  ;;  %v414_v43 = vshrl.u32 %v5200_v6, 16 }
  0x5e   : > { %v3394_v1 = vcombine.low %v389_v27, %v399_v2  ;;  %v1526_v32 = vrot.slane %v1525_v50, 4  ;;  %v1536_v26 = vrot.slane %v1535_v51, 4  ;;  %v412_v39 = vrot.slane %v410_v37, 5 }
  0x5f   : > { %v407_v28 = vor.u32 %v406_v22, %v403_v59  ;;  %v416_v62 = vrot.slane %v414_v43, 4  ;;  %v420_v49 = vshll.u32 %v5209_v20, 16  ;;  %v1543_v21 = vshrl.u32 %v3531_v63, 16 }
  0x60   : > { %4029 = vmatprep.mubr.bf16.mxu1 %v3394_v1  ;;  %v1531_v47 = vsel %vm4942_vm2, %v1526_v32, %v1530_v19  ;;  %v1541_v35 = vsel %vm4942_vm2, %v1536_v26, %v1540_v56  ;;  %v1546_v38 = vshll.u32 %v3531_v63, 16  ;;  %v1552_v27 = vshll.u32 %v5218_v3, 16 }
  0x61   : > { %v3556_v40 = vcombine.low %v1531_v47, %v1541_v35  ;;  %v408_v50 = vrot.slane %v407_v28, 4  ;;  %v417_v51 = vor.u32 %v416_v62, %v412_v39  ;;  %v422_v37 = vrot.slane %v420_v49, 5  ;;  %v3567_v49 = vld [vmem:[%s4897_s28 + $0x18] sm:$0xe]  ;;  %v3568_v47 = vld [vmem:[%s4897_s28 + $0x24] sm:$0xe] }
  0x62   : > { %v1545_v2 = vrot.slane %v1543_v21, 4  ;;  %v1548_v59 = vrot.slane %v1546_v38, 5  ;;  %v1554_v22 = vrot.slane %v1552_v27, 5  ;;  %v1556_v43 = vshrl.u32 %v5218_v3, 16 }
  0x63   : > { %4157 = vmatprep.mubr.bf16.mxu0 %v3556_v40  ;;  %v413_v19 = vsel %vm4942_vm2, %v408_v50, %v412_v39  ;;  %v418_v1 = vrot.slane %v417_v51, 4  ;;  %v1562_v26 = vshll.u32 %v5224_v53, 16  ;;  %v3574_v63 = vrot.slane %v3566_v58, 9 }
  0x64   : > { %v1549_v56 = vor.u32 %v1548_v59, %v1545_v2  ;;  %v1558_v32 = vrot.slane %v1556_v43, 4  ;;  %v1810_v21 = vrot.slane %v4921_v23, 5  ;;  %v3404_v39 = vcombine.low %v4906_v12, %v4909_v13 }
  0x65   : > { %v423_v62 = vsel %vm4942_vm2, %v418_v1, %v422_v37  ;;  %v1564_v27 = vrot.slane %v1562_v26, 5  ;;  %v1824_v37 = vrot.slane %v5010_v52, 5  ;;  %v6044_v12 = vrot.slane %v4966_v61, 5  ;;  %v5289_v61 = vld [vmem:[%s4897_s28 + $0x48] sm:$0xe] }
  0x66   : > { %v3395_v35 = vcombine.low %v413_v19, %v423_v62  ;;  %v1550_v58 = vrot.slane %v1549_v56, 4  ;;  %v1559_v38 = vor.u32 %v1558_v32, %v1554_v22  ;;  %v1811_v40 = vsel %vm5239_vm5, %v3574_v63, %v1810_v21  ;;  %v3569_v63 = vld [vmem:[%s4897_s28 + $0x30] sm:$0xe] }
  0x67   : > { %v1812_v50 = vrot.slane %v1810_v21, 4  ;;  %v1819_v13 = vrot.slane %v6044_v12, 4  ;;  %v1820_v2 = vrot.slane %v4978_v7, 5  ;;  %v6045_v59 = vrot.slane %v4924_v24, 5 }
  0x68   : > { %4030 = vmatmul.mubr.bf16.gmra.mrb[12].mxu1 %v3395_v35  ;;  %v1555_v23 = vsel %vm4942_vm2, %v1550_v58, %v1554_v22  ;;  %v1560_v51 = vrot.slane %v1559_v38, 4  ;;  %v3575_v22 = vrot.slane %v3567_v49, 9  ;;  %v3576_v26 = vrot.slane %v3568_v47, 9  ;;  %v3570_v49 = vld [vmem:[%s4897_s28 + $0x3c] sm:$0xe]  ;;  %v4543_v35 = vld [vmem:[%s6031_s1 + $0x88] sm:$0xff]  }
  0x69   : > { %4049 = vmatprep.mubr.bf16.mxu1 %v3404_v39  ;;  %v1814_v43 = vsel %vm5239_vm5, %v1812_v50, %v6045_v59  ;;  %v1826_v56 = vrot.slane %v1824_v37, 4  ;;  %v1827_v32 = vrot.slane %v5015_v57, 5  ;;  %v843_v7 = vrot.slane %v4912_v14, 5 }
  0x6a   : > { %v1565_v19 = vsel %vm4942_vm2, %v1560_v51, %v1564_v27  ;;  %v3598_v1 = vcombine.low %v1811_v40, %v1814_v43  ;;  %v850_v24 = vrot.slane %v4958_v54, 5  ;;  %v3405_v21 = vcombine.low %v4935_v34, %v4948_v41  ;;  %v4549_v43 = vld [vmem:[%s6031_s1 + $0x98] sm:$0xff]  }
  0x6b   : > { %v3557_v52 = vcombine.low %v1555_v23, %v1565_v19  ;;  %v1821_v62 = vsel %vm5239_vm5, %v1819_v13, %v1820_v2  ;;  %v3406_v39 = vcombine.low %v4987_v25, %v4995_v33  ;;  %v6046_v47 = vmov %v6044_v12  ;;  %v5299_v23 = vld [vmem:[%s4897_s28 + $0x54] sm:$0xe] }
  0x6c   : > { %v1818_v57 = vsel %vm5239_vm5, %v3575_v22, %v6046_v47  ;;  %v3577_v34 = vrot.slane %v3569_v63, 9  ;;  %v1831_v41 = vrot.slane %v5041_v31, 5  ;;  %v1838_v58 = vrot.slane %v5098_v48, 5  ;;  %v4544_v48 = vld [vmem:[%s6031_s1 + $0x188] sm:$0xff]  }
  0x6d   : > { %4158 = vmatmul.mubr.bf16.gmra.mrb[12].mxu0 %v3557_v52  ;;  %v1825_v25 = vsel %vm5239_vm5, %v3576_v26, %v1824_v37  ;;  %v1828_v33 = vsel %vm5239_vm5, %v1826_v56, %v1827_v32  ;;  %v1834_v38 = vrot.slane %v5060_v55, 5  ;;  %v3578_v27 = vrot.slane %v3570_v49, 9  ;;  %v5302_v55 = vld [vmem:[%s4897_s28 + $0x60] sm:$0xe]  ;;  %v5329_v56 = vld [vmem:[%s4897_s28 + $0x4] sm:$0xf] }
  0x6e   : > { %4177 = vmatprep.mubr.bf16.mxu0 %v3598_v1  ;;  %v1841_v40 = vrot.slane %v5107_v0, 5  ;;  %v1845_v50 = vrot.slane %v5135_v45, 5  ;;  %v3599_v31 = vcombine.low %v1818_v57, %v1821_v62  ;;  %v3600_v51 = vcombine.low %v1825_v25, %v1828_v33  ;;  %v4553_v49 = vld [vmem:[%s6031_s1 + $0xa0] sm:$0xff]   ;;  %v5384_v45 = vld [vmem:[%s4897_s28 + $0x18] sm:$0xe] }
  0x6f   : > { %v1833_v37 = vrot.slane %v1831_v41, 4  ;;  %v1840_v12 = vrot.slane %v1838_v58, 4  ;;  %v3407_v0 = vcombine.low %v5024_v4, %v5031_v16  ;;  %v1832_v13 = vsel %vm5239_vm5, %v3577_v34, %v1831_v41  ;;  %v5352_v41 = vld [vmem:[%s4897_s28 + $0x10] sm:$0xf] }
  0x70   : > { %4050 = vmatmul.mubr.bf16.vlgmr.msra.gmra.mrb[0].mxu1 %v3405_v21  ;;  %v3408_v2 = vcombine.low %v5067_v5, %v5073_v9  ;;  %v3579_v59 = vrot.slane %v5289_v61, 9  ;;  %v1847_v4 = vrot.slane %v1845_v50, 4  ;;  %v1848_v19 = vrot.slane %v5148_v60, 5  ;;  %v4548_v5 = vld [vmem:[%s6031_s1 + $0x190] sm:$0xff]   ;;  %v811_v21 = vld [vmem:[%s4897_s28] sm:$0xe] }
  0x71   : > { %4066 = vmatpush3.bf16.msra.mxu1 %v5153_v18  ;;  %4053 = vmatprep.mubr.bf16.mxu1 %v3406_v39  ;;  %v4547_v18 = vld [vmem:[%s6031_s1 + $0x90] sm:$0xff]   ;;  %v3580_v1 = vrot.slane %v5299_v23, 9  ;;  %v1852_v22 = vrot.slane %v5189_v30, 5  ;;  %v1855_v26 = vrot.slane %v5194_v44, 5  ;;  %v3581_v63 = vrot.slane %v5302_v55, 9 }
  0x72   : > { %4067 = vmatprep.subr.bf16.mxu1 %v4543_v35  ;;  %v1859_v52 = vrot.slane %v5218_v3, 5  ;;  %v840_v60 = vrot.slane %v5329_v56, 5  ;;  %v1835_v30 = vsel %vm5239_vm5, %v1833_v37, %v1834_v38  ;;  %v1839_v32 = vsel %vm5239_vm5, %v3578_v27, %v1838_v58  ;;  %v814_v61 = vld [vmem:[%s4897_s28 + $0x24] sm:$0xe]  ;;  %v816_v56 = vld [vmem:[%s4897_s28 + $0x3c] sm:$0xe] }
  0x73   : > { %v1842_v44 = vsel %vm5239_vm5, %v1840_v12, %v1841_v40  ;;  %v3601_v62 = vcombine.low %v1832_v13, %v1835_v30  ;;  %v1854_v47 = vrot.slane %v1852_v22, 4  ;;  %v1862_v57 = vrot.slane %v5224_v53, 5  ;;  %v4555_v40 = vld [vmem:[%s6031_s1 + $0xa8] sm:$0xff]   ;;  %v4669_v30 = vld [vmem:[%s4897_s28 + $0x1c] sm:$0xf]  ;;  %v4560_v53 = vld [vmem:[%s6031_s1 + $0x1b0] sm:$0xff]  }
  0x74   : > { %v3602_v39 = vcombine.low %v1839_v32, %v1842_v44  ;;  %v3420_v34 = vrot.slane %v811_v21, 9  ;;  %v847_v58 = vrot.slane %v5352_v41, 5  ;;  %v861_v25 = vrot.slane %v5031_v16, 5  ;;  %v818_v41 = vld [vmem:[%s4897_s28 + $0x54] sm:$0xe] }
  0x75   : > { %4178 = vmatmul.mubr.bf16.vlgmr.msra.gmra.mrb[0].mxu0 %v3599_v31  ;;  %4068 = vmatpush3.bf16.msra.mxu1 %v4543_v35  ;;  %v5349_v35 = vrot.slane %v1859_v52, 4  ;;  %v842_v33 = vrot.slane %v840_v60, 4  ;;  %v864_v38 = vrot.slane %v5034_v17, 5  ;;  %v3409_v27 = vcombine.low %v5116_v10, %v5119_v11 }
  0x76   : > { %4194 = vmatpush3.bf16.msra.mxu0 %v5183_v15  ;;  %4181 = vmatprep.mubr.bf16.mxu0 %v3600_v51  ;;  %v4550_v15 = vld [vmem:[%s6031_s1 + $0x198] sm:$0xff]   ;;  %v3410_v31 = vcombine.low %v5161_v42, %v5167_v46  ;;  %v3423_v16 = vrot.slane %v814_v61, 9  ;;  %v863_v23 = vrot.slane %v861_v25, 4  ;;  %v1846_v17 = vsel %vm5239_vm5, %v3579_v59, %v1845_v50  ;;  %v4554_v51 = vld [vmem:[%s6031_s1 + $0x1a0] sm:$0xff]  }
  0x77   : > { %4195 = vmatprep.subr.bf16.mxu0 %v4544_v48  ;;  %4069 = vmatprep.subr.bf16.mxu1 %v4547_v18  ;;  %v1849_v10 = vsel %vm5239_vm5, %v1847_v4, %v1848_v19  ;;  %v1853_v42 = vsel %vm5239_vm5, %v3580_v1, %v1852_v22  ;;  %v1856_v37 = vsel %vm5239_vm5, %v1854_v47, %v1855_v26  ;;  %v868_v13 = vrot.slane %v5073_v9, 5  ;;  %v815_v4 = vld [vmem:[%s4897_s28 + $0x30] sm:$0xe]  ;;  %v4556_v1 = vld [vmem:[%s6031_s1 + $0x1a8] sm:$0xff]  }
  0x78   : > { %4054 = vmatmul.mubr.bf16.gmra.mrb[4].mxu1 %v3407_v0  ;;  %v5388_v50 = vsel %vm5239_vm5, %v3423_v16, %v861_v25  ;;  %v5392_v12 = vsel %vm5239_vm5, %v863_v23, %v864_v38  ;;  %v3411_v59 = vcombine.low %v5197_v8, %v5200_v6  ;;  %v871_v19 = vrot.slane %v5083_v29, 5  ;;  %v4559_v29 = vld [vmem:[%s6031_s1 + $0xb0] sm:$0xff]   ;;  %v6048_v38 = vld [vmem:[#allocation6_spill] sm:$0xff] }
  0x79   : > { %4070 = vmatpush3.bf16.msra.mxu1 %v4547_v18  ;;  %4057 = vmatprep.mubr.bf16.mxu1 %v3408_v2  ;;  %v3447_v18 = vcombine.low %v5388_v50, %v5392_v12  ;;  %v3603_v2 = vcombine.low %v1846_v17, %v1849_v10  ;;  %v3604_v9 = vcombine.low %v1853_v42, %v1856_v37  ;;  %v3424_v8 = vrot.slane %v815_v4, 9  ;;  %v4562_v16 = vld [vmem:[%s6031_s1 + $0x1b8] sm:$0xff]   ;;  %v4575_v50 = vld [vmem:[%s4897_s28 + $0x48] sm:$0xff]   ;;  %v4576_v12 = vld [vmem:[%s6031_s1 + $0xe0] sm:$0xff]  }
  0x7a   : > { %4196 = vmatpush3.bf16.msra.mxu0 %v4544_v48  ;;  %4071 = vmatprep.subr.bf16.mxu1 %v4549_v43  ;;  %v5368_v48 = vld [vmem:[%s4897_s28 + $0xc] sm:$0xe]  ;;  %v841_v22 = vsel %vm5239_vm5, %v3420_v34, %v840_v60  ;;  %v844_v26 = vsel %vm5239_vm5, %v842_v33, %v843_v7  ;;  %v854_v32 = vrot.slane %v4669_v30, 5  ;;  %v875_v44 = vrot.slane %v5119_v11, 5  ;;  %v6047_v60 = vld [vmem:[#allocation5_spill] sm:$0xff]  ;;  %v4561_v7 = vld [vmem:[%s6031_s1 + $0xb8] sm:$0xff]  }
  0x7b   : > { %4197 = vmatprep.subr.bf16.mxu0 %v4548_v5  ;;  %v3421_v0 = vrot.slane %v5368_v48, 9  ;;  %v878_v21 = vrot.slane %v6047_v60, 5  ;;  %v1860_v11 = vsel %vm5239_vm5, %v3581_v63, %v1859_v52  ;;  %v1863_v3 = vsel %vm5239_vm5, %v5349_v35, %v1862_v57  ;;  %v817_v35 = vld [vmem:[%s4897_s28 + $0x48] sm:$0xe] }
  0x7c   : > { %v877_v25 = vrot.slane %v875_v44, 4  ;;  %v3444_v55 = vcombine.low %v841_v22, %v844_v26  ;;  %v856_v52 = vrot.slane %v854_v32, 4  ;;  %v882_v61 = vrot.slane %v5167_v46, 5  ;;  %v5519_v26 = vld [vmem:[%s4897_s28 + $0x20] sm:$0x1] }
  0x7d   : > { %4182 = vmatmul.mubr.bf16.gmra.mrb[4].mxu0 %v3601_v62  ;;  %4072 = vmatpush3.bf16.msra.mxu1 %v4549_v43  ;;  %v849_v43 = vrot.slane %v847_v58, 4  ;;  %v3422_v62 = vrot.slane %v5384_v45, 9  ;;  %v848_v46 = vsel %vm5239_vm5, %v3421_v0, %v847_v58  ;;  %v889_v10 = vrot.slane %v5200_v6, 5  ;;  %v4564_v6 = vld [vmem:[%s6031_s1 + $0xc0] sm:$0xff]  }
  0x7e   : > { %4198 = vmatpush3.bf16.msra.mxu0 %v4548_v5  ;;  %4185 = vmatprep.mubr.bf16.mxu0 %v3602_v39  ;;  %v870_v5 = vrot.slane %v868_v13, 4  ;;  %v3425_v39 = vrot.slane %v816_v56, 9  ;;  %v5454_v33 = vsel %vm5239_vm5, %v877_v25, %v878_v21  ;;  %v884_v48 = vrot.slane %v882_v61, 4  ;;  %v4568_v56 = vld [vmem:[%s6031_s1 + $0x1c8] sm:$0xff]  }
  0x7f   : > { %4199 = vmatprep.subr.bf16.mxu0 %v4550_v15  ;;  %4073 = vmatprep.subr.bf16.mxu1 %v4553_v49  ;;  %v851_v23 = vsel %vm5239_vm5, %v849_v43, %v850_v24  ;;  %v855_v17 = vsel %vm5239_vm5, %v3422_v62, %v854_v32  ;;  %v892_v58 = vrot.slane %v5209_v20, 5  ;;  %v3427_v37 = vrot.slane %v818_v41, 9  ;;  %v4567_v43 = vld [vmem:[%s6031_s1 + $0xc8] sm:$0xff]   ;;  %v3667_v62 = vld [vmem:[%s4897_s28 + $0x24] sm:$0xf] }
  0x80   : > { %4058 = vmatmul.mubr.bf16.gmra.mrb[8].mxu1 %v3409_v27  ;;  %v5429_v14 = vsel %vm5239_vm5, %v870_v5, %v871_v19  ;;  %v5450_v63 = vsel %vm5239_vm5, %v3425_v39, %v875_v44  ;;  %v885_v27 = vrot.slane %v6048_v38, 5  ;;  %v891_v45 = vrot.slane %v889_v10, 4  ;;  %v4566_v19 = vld [vmem:[%s6031_s1 + $0x1c0] sm:$0xff]   ;;  %v4570_v44 = vld [vmem:[%s6031_s1 + $0xd0] sm:$0xff]   ;;  %v5540_v25 = vld [vmem:[%s4897_s28 + $0x28] sm:$0xf] }
  0x81   : > { %4074 = vmatpush3.bf16.msra.mxu1 %v4553_v49  ;;  %4061 = vmatprep.mubr.bf16.mxu1 %v3410_v31  ;;  %v4670_v49 = vld [vmem:[%s4897_s28 + $0x20] sm:$0x1]  ;;  %v3449_v57 = vcombine.low %v5450_v63, %v5454_v33  ;;  %v3426_v31 = vrot.slane %v817_v35, 9  ;;  %v3445_v0 = vcombine.low %v848_v46, %v851_v23  ;;  %v4565_v5 = vld [vmem:[%s4897_s28 + $0x24] sm:$0xff]   ;;  %v4572_v39 = vld [vmem:[%s6031_s1 + $0x1d0] sm:$0xff]  }
  0x82   : > { %4200 = vmatpush3.bf16.msra.mxu0 %v4550_v15  ;;  %4075 = vmatprep.subr.bf16.mxu1 %v4555_v40  ;;  %v5425_v15 = vsel %vm5239_vm5, %v3424_v8, %v868_v13  ;;  %v857_v47 = vrot.slane %v4670_v49, 5  ;;  %v5489_v24 = vsel %vm5239_vm5, %v884_v48, %v885_v27  ;;  %v5498_v13 = vsel %vm5239_vm5, %v3427_v37, %v889_v10  ;;  %v4571_v35 = vld [vmem:[%s4897_s28 + $0x3c] sm:$0xff]   ;;  %v5559_v46 = vld [vmem:[%s4897_s28 + $0x34] sm:$0xf]  ;;  %v5582_v37 = vld [vmem:[%s4897_s28 + $0x38] sm:$0x1] }
  0x83   : > { %4201 = vmatprep.subr.bf16.mxu0 %v4554_v51  ;;  %v3448_v34 = vcombine.low %v5425_v15, %v5429_v14  ;;  %v5485_v54 = vsel %vm5239_vm5, %v3426_v31, %v882_v61  ;;  %v4574_v38 = vld [vmem:[%s6031_s1 + $0x1d8] sm:$0xff]   ;;  %v2378_v27 = vshll.u32 %v5540_v25, 16  ;;  %v2402_v41 = vshll.u32 %v5559_v46, 16 }
  0x84   : > { %v858_v42 = vsel %vm5239_vm5, %v856_v52, %v857_v47  ;;  %v3450_v20 = vcombine.low %v5485_v54, %v5489_v24  ;;  %v2372_v52 = vshll.u32 %v3667_v62, 16  ;;  %v2406_v10 = vshrl.u32 %v5559_v46, 16  ;;  %v4580_v54 = vld [vmem:[%s6031_s1 + $0x1e8] sm:$0xff]   ;;  %v4582_v24 = vld [vmem:[%s6031_s1 + $0xf0] sm:$0xff]  }
  0x85   : > { %4186 = vmatmul.mubr.bf16.gmra.mrb[8].mxu0 %v3603_v2  ;;  %4076 = vmatpush3.bf16.msra.mxu1 %v4555_v40  ;;  %v3605_v40 = vcombine.low %v1860_v11, %v1863_v3  ;;  %v3446_v2 = vcombine.low %v855_v17, %v858_v42  ;;  %v4573_v11 = vld [vmem:[%s6031_s1 + $0xd8] sm:$0xff]   ;;  %v5543_v3 = vld [vmem:[%s4897_s28 + $0x2c] sm:$0x1]  ;;  %v2794_v36 = vrot.slane %v5559_v46, 5 }
  0x86   : > { %4202 = vmatpush3.bf16.msra.mxu0 %v4554_v51  ;;  %4189 = vmatprep.mubr.bf16.mxu0 %v3604_v9  ;;  %v4563_v51 = vld [vmem:[%s4897_s28 + $0x18] sm:$0xff]   ;;  %v2388_v48 = vshll.u32 %v5543_v3, 16  ;;  %v2790_v46 = vrot.slane %v5543_v3, 5 }
  0x87   : > { %4203 = vmatprep.subr.bf16.mxu0 %v4556_v1  ;;  %4077 = vmatprep.subr.bf16.mxu1 %v4559_v29  ;;  %v5514_v9 = vld [vmem:[%s4897_s28 + $0x1c] sm:$0xf] }
  0x88   : > { %4062 = vmatmul.mubr.bf16.gmra.mrb[12].mxu1 %v3411_v59  ;;  %v5502_v59 = vsel %vm5239_vm5, %v891_v45, %v892_v58  ;;  %v2354_v30 = vshll.u32 %v5514_v9, 16  ;;  %v2358_v32 = vshrl.u32 %v5514_v9, 16  ;;  %v4578_v58 = vld [vmem:[%s6031_s1 + $0x1e0] sm:$0xff]  }
  0x89   : > { %4078 = vmatpush3.bf16.msra.mxu1 %v4559_v29  ;;  %4081 = vmatprep.mubr.bf16.mxu1 %v3444_v55  ;;  %v3451_v4 = vcombine.low %v5498_v13, %v5502_v59  ;;  %v4569_v29 = vld [vmem:[%s4897_s28 + $0x30] sm:$0xff]   ;;  %v2369_v55 = vshrl.u32 %v3667_v62, 16  ;;  %v5626_v62 = vrot.slane %v2388_v48, 5 }
  0x8a   : > { %4204 = vmatpush3.bf16.msra.mxu0 %v4556_v1  ;;  %4079 = vmatprep.subr.bf16.mxu1 %v4561_v7  ;;  %v3664_v1 = vld [vmem:[%s4897_s28 + $0x18] sm:$0xf]  ;;  %v5537_v49 = vrot.slane %v2354_v30, 5  ;;  %v2360_v47 = vrot.slane %v2358_v32, 4 }
  0x8b   : > { %4205 = vmatprep.subr.bf16.mxu0 %v4560_v53  ;;  %v2345_v22 = vshrl.u32 %v3664_v1, 16  ;;  %v2348_v8 = vshll.u32 %v3664_v1, 16  ;;  %v2371_v14 = vrot.slane %v2369_v55, 4  ;;  %v4581_v1 = vld [vmem:[%s4897_s28 + $0x60] sm:$0xff]   ;;  %v4585_v55 = vld [vmem:[%s6031_s1 + $0xf8] sm:$0xff]  }
  0x8d   : > { %4190 = vmatmul.mubr.bf16.gmra.mrb[12].mxu0 %v3605_v40  ;;  %4080 = vmatpush3.bf16.msra.mxu1 %v4561_v7  ;;  %v2347_v60 = vrot.slane %v2345_v22, 4  ;;  %v2350_v21 = vrot.slane %v2348_v8, 5  ;;  %v2364_v7 = vshll.u32 %v5519_v26, 16  ;;  %v2382_v40 = vshrl.u32 %v5540_v25, 16 }
  0x8e   : > { %4206 = vmatpush3.bf16.msra.mxu0 %v4560_v53  ;;  %4209 = vmatprep.mubr.bf16.mxu0 %v4563_v51  ;;  %v3670_v53 = vld [vmem:[%s4897_s28 + $0x30] sm:$0xf]  ;;  %v5579_v51 = vrot.slane %v2378_v27, 5  ;;  %v5597_v8 = vrot.slane %v2402_v41, 5  ;;  %v5644_v27 = vld [vmem:[%s4897_s28 + $0x44] sm:$0x1] }
  0x8f   : > { %4207 = vmatprep.subr.bf16.mxu0 %v4562_v16  ;;  %4097 = vmatprep.subr.bf16.mxu1 %v4564_v6  ;;  %v2351_v61 = vor.u32 %v2350_v21, %v2347_v60  ;;  %v2393_v31 = vshrl.u32 %v3670_v53, 16  ;;  %v5566_v15 = vrot.slane %v2364_v7, 5  ;;  %v2396_v17 = vshll.u32 %v3670_v53, 16 }
  0x90   : > { %4082 = vmatmul.mubr.bf16.vlgmr.msra.gmra.mrb[0].mxu1 %v3445_v0  ;;  %v2384_v42 = vrot.slane %v2382_v40, 4  ;;  %v3673_v0 = vld [vmem:[%s4897_s28 + $0x3c] sm:$0xf] }
  0x91   : > { %4098 = vmatpush3.bf16.msra.mxu1 %v4564_v6  ;;  %4085 = vmatprep.mubr.bf16.mxu1 %v3446_v2  ;;  %v5572_v23 = vrot.slane %v2351_v61, 4  ;;  %v5586_v45 = vrot.slane %v2393_v31, 4  ;;  %v2398_v22 = vrot.slane %v2396_v17, 5  ;;  %v2417_v32 = vshrl.u32 %v3673_v0, 16  ;;  %v4583_v31 = vld [vmem:[%s4897_s28 + $0x6c] sm:$0xff]  }
  0x92   : > { %4208 = vmatpush3.bf16.msra.mxu0 %v4562_v16  ;;  %4099 = vmatprep.subr.bf16.mxu1 %v4567_v43  ;;  %v4579_v16 = vld [vmem:[%s6031_s1 + $0xe8] sm:$0xff]   ;;  %v2385_v30 = vor.u32 %v2384_v42, %v5579_v51  ;;  %v2420_v63 = vshll.u32 %v3673_v0, 16 }
  0x93   : > { %4225 = vmatprep.subr.bf16.mxu0 %v4566_v19  ;;  %v2399_v53 = vor.u32 %v2398_v22, %v5586_v45  ;;  %v2419_v40 = vrot.slane %v2417_v32, 4  ;;  %v4588_v45 = vld [vmem:[%s4897_s28 + $0x18] sm:$0xff]   ;;  %v5682_v32 = vld [vmem:[%s4897_s28 + $0x64] sm:$0xf] }
  0x94   : > { %v5637_v61 = vrot.slane %v2385_v30, 4  ;;  %v3682_v30 = vld [vmem:[%s4897_s28 + $0x60] sm:$0xf] }
  0x95   : > { %4210 = vmatmul.mubr.bf16.vlgmr.msra.gmra.mrb[0].mxu0 %v4565_v5  ;;  %4100 = vmatpush3.bf16.msra.mxu1 %v4567_v43  ;;  %v5590_v43 = vld [vmem:[%s4897_s28 + $0x40] sm:$0xf]  ;;  %v2408_v5 = vrot.slane %v2406_v10, 4  ;;  %v2400_v41 = vrot.slane %v2399_v53, 4  ;;  %v2436_v10 = vshll.u32 %v5644_v27, 16 }
  0x96   : > { %4226 = vmatpush3.bf16.msra.mxu0 %v4566_v19  ;;  %4213 = vmatprep.mubr.bf16.mxu0 %v4569_v29  ;;  %v4577_v19 = vld [vmem:[%s4897_s28 + $0x54] sm:$0xff]   ;;  %v2412_v29 = vshll.u32 %v5582_v37, 16  ;;  %v2426_v33 = vshll.u32 %v5590_v43, 16  ;;  %v5710_v53 = vld [vmem:[%s4897_s28 + $0x5c] sm:$0x1] }
  0x97   : > { %4227 = vmatprep.subr.bf16.mxu0 %v4568_v56  ;;  %4101 = vmatprep.subr.bf16.mxu1 %v4570_v44 }
  0x98   : > { %4086 = vmatmul.mubr.bf16.gmra.mrb[4].mxu1 %v3447_v18  ;;  %v2361_v18 = vor.u32 %v2360_v47, %v5537_v49 }
  0x99   : > { %4102 = vmatpush3.bf16.msra.mxu1 %v4570_v44  ;;  %4089 = vmatprep.mubr.bf16.mxu1 %v3448_v34  ;;  %v2374_v34 = vrot.slane %v2372_v52, 5  ;;  %v5608_v44 = vld [vmem:[%s4897_s28 + $0x4c] sm:$0xf] }
  0x9a   : > { %4228 = vmatpush3.bf16.msra.mxu0 %v4568_v56  ;;  %4103 = vmatprep.subr.bf16.mxu1 %v4573_v11  ;;  %v5584_v6 = vrot.slane %v2361_v18, 4  ;;  %v3676_v56 = vld [vmem:[%s4897_s28 + $0x48] sm:$0xf]  ;;  %v2450_v7 = vshll.u32 %v5608_v44, 16  ;;  %v2454_v47 = vshrl.u32 %v5608_v44, 16  ;;  %v4587_v52 = vld [vmem:[%s4897_s28 + $0xc] sm:$0xff]  }
  0x9b   : > { %4229 = vmatprep.subr.bf16.mxu0 %v4572_v39  ;;  %v2375_v2 = vor.u32 %v2374_v34, %v2371_v14 }
  0x9c   : > { %v2367_v60 = vsel %vm4942_vm2, %v5584_v6, %v5566_v15  ;;  %v5650_v15 = vld [vmem:[%s4897_s28 + $0x50] sm:$0x1]  ;;  %v5655_v48 = vrot.slane %v2450_v7, 5  ;;  %v5665_v6 = vld [vmem:[%s4897_s28 + $0x58] sm:$0xf] }
  0x9d   : > { %4214 = vmatmul.mubr.bf16.gmra.mrb[4].mxu0 %v4571_v35  ;;  %4104 = vmatpush3.bf16.msra.mxu1 %v4573_v11  ;;  %v5624_v21 = vrot.slane %v2375_v2, 4  ;;  %v2444_v11 = vshll.u32 %v3676_v56, 16  ;;  %v2409_v35 = vor.u32 %v2408_v5, %v5597_v8  ;;  %v2460_v42 = vshll.u32 %v5650_v15, 16 }
  0x9e   : > { %4230 = vmatpush3.bf16.msra.mxu0 %v4572_v39  ;;  %4217 = vmatprep.mubr.bf16.mxu0 %v4575_v50  ;;  %v2441_v39 = vshrl.u32 %v3676_v56, 16  ;;  %v2422_v50 = vrot.slane %v2420_v63, 5  ;;  %v2391_v2 = vsel %vm4942_vm2, %v5637_v61, %v5626_v62  ;;  %v2405_v63 = vsel %vm4942_vm2, %v2400_v41, %v5597_v8  ;;  %v5707_v61 = vld [vmem:[%s6031_s1 + $0x210] sm:$0xff]  }
  0x9f   : > { %4231 = vmatprep.subr.bf16.mxu0 %v4574_v38  ;;  %4105 = vmatprep.subr.bf16.mxu1 %v4576_v12  ;;  %v2446_v34 = vrot.slane %v2444_v11, 5  ;;  %v2410_v13 = vrot.slane %v2409_v35, 4  ;;  %v2381_v0 = vsel %vm4942_vm2, %v5624_v21, %v5579_v51  ;;  %v4591_v51 = vld [vmem:[%s4897_s28 + $0x24] sm:$0xff]   ;;  %v2478_v56 = vshrl.u32 %v5665_v6, 16 }
  0xa0   : > { %4090 = vmatmul.mubr.bf16.gmra.mrb[8].mxu1 %v3449_v57  ;;  %v2430_v57 = vshrl.u32 %v5590_v43, 16  ;;  %v2443_v14 = vrot.slane %v2441_v39, 4  ;;  %v2423_v59 = vor.u32 %v2422_v50, %v2419_v40  ;;  %v5700_v8 = vrot.slane %v2460_v42, 5  ;;  %v3685_v50 = vld [vmem:[%s4897_s28 + $0x6c] sm:$0xf] }
  0xa1   : > { %4106 = vmatpush3.bf16.msra.mxu1 %v4576_v12  ;;  %4093 = vmatprep.mubr.bf16.mxu1 %v3450_v20  ;;  %v2357_v20 = vsel %vm4942_vm2, %v5572_v23, %v5537_v49  ;;  %v4584_v49 = vld [vmem:[%s6031_s1 + $0x1f0] sm:$0xff]   ;;  %v5646_v12 = vrot.slane %v2426_v33, 5  ;;  %v4586_v23 = vld [vmem:[%s6031_s1 + $0x1f8] sm:$0xff]   ;;  %v5688_v33 = vrot.slane %v2436_v10, 5  ;;  %v2489_v21 = vshrl.u32 %v3682_v30, 16 }
  0xa2   : > { %4232 = vmatpush3.bf16.msra.mxu0 %v4574_v38  ;;  %4107 = vmatprep.subr.bf16.mxu1 %v4579_v16  ;;  %v5641_v38 = vrot.slane %v2412_v29, 5  ;;  %v2432_v18 = vrot.slane %v2430_v57, 4  ;;  %v3704_v17 = vcombine.low %v2357_v20, %v2367_v60  ;;  %v2474_v57 = vshll.u32 %v5665_v6, 16 }
  0xa3   : > { %4233 = vmatprep.subr.bf16.mxu0 %v4578_v58  ;;  %v2424_v20 = vrot.slane %v2423_v59, 4  ;;  %v2492_v62 = vshll.u32 %v3682_v30, 16  ;;  %v2498_v39 = vshll.u32 %v5682_v32, 16  ;;  %v2502_v11 = vshrl.u32 %v5682_v32, 16 }
  0xa4   : > { %v5712_v35 = vrot.slane %v2474_v57, 5  ;;  %v2513_v59 = vshrl.u32 %v3685_v50, 16 }
  0xa5   : > { %4218 = vmatmul.mubr.bf16.gmra.mrb[8].mxu0 %v4577_v19  ;;  %4108 = vmatpush3.bf16.msra.mxu1 %v4579_v16  ;;  %v2456_v16 = vrot.slane %v2454_v47, 4  ;;  %v4589_v19 = vld [vmem:[%s6031_s1 + $0x200] sm:$0xff]   ;;  %v2429_v41 = vsel %vm4942_vm2, %v2424_v20, %v5646_v12 }
  0xa6   : > { %4234 = vmatpush3.bf16.msra.mxu0 %v4578_v58  ;;  %4221 = vmatprep.mubr.bf16.mxu0 %v4581_v1  ;;  %v3679_v58 = vld [vmem:[%s4897_s28 + $0x54] sm:$0xf]  ;;  %v2447_v1 = vor.u32 %v2446_v34, %v2443_v14  ;;  %v2494_v14 = vrot.slane %v2492_v62, 5  ;;  %v5719_v34 = vrot.slane %v2498_v39, 5 }
  0xa7   : > { %4235 = vmatprep.subr.bf16.mxu0 %v4580_v54  ;;  %4109 = vmatprep.subr.bf16.mxu1 %v4582_v24  ;;  %v2457_v22 = vor.u32 %v2456_v16, %v5655_v48  ;;  %v2465_v5 = vshrl.u32 %v3679_v58, 16  ;;  %v2468_v29 = vshll.u32 %v3679_v58, 16  ;;  %v2504_v16 = vrot.slane %v2502_v11, 4  ;;  %v5729_v58 = vld [vmem:[%s4897_s28 + $0x68] sm:$0x1] }
  0xa8   : > { %4094 = vmatmul.mubr.bf16.gmra.mrb[12].mxu1 %v3451_v4  ;;  %v2433_v4 = vor.u32 %v2432_v18, %v5646_v12  ;;  %v2448_v7 = vrot.slane %v2447_v1, 4  ;;  %v5717_v18 = vld [vmem:[%s4897_s28 + $0x70] sm:$0xf]  ;;  %v5738_v12 = vld [vmem:[%s6031_s1 + $0x218] sm:$0xff]   ;;  %v2484_v1 = vshll.u32 %v5710_v53, 16 }
  0xa9   : > { %4110 = vmatpush3.bf16.msra.mxu1 %v4582_v24  ;;  %4113 = vmatprep.mubr.bf16.mxu1 %v4587_v52  ;;  %v2415_v24 = vsel %vm4942_vm2, %v2410_v13, %v5641_v38  ;;  %v2458_v47 = vrot.slane %v2457_v22, 4  ;;  %v3705_v52 = vcombine.low %v2381_v0, %v2391_v2  ;;  %v2480_v38 = vrot.slane %v2478_v56, 4  ;;  %v4595_v13 = vld [vmem:[%s4897_s28 + $0x3c] sm:$0xff]   ;;  %v3724_v11 = vld [vmem:[%s4897_s28 + $0x48] sm:$0xe] }
  0xaa   : > { %4236 = vmatpush3.bf16.msra.mxu0 %v4580_v54  ;;  %4111 = vmatprep.subr.bf16.mxu1 %v4585_v55  ;;  %v5695_v54 = vld [vmem:[%s6031_s1 + $0x208] sm:$0xff]   ;;  %v2434_v60 = vrot.slane %v2433_v4, 4  ;;  %v3706_v40 = vcombine.low %v2405_v63, %v2415_v24  ;;  %v2516_v4 = vshll.u32 %v3685_v50, 16  ;;  %v2522_v42 = vshll.u32 %v5717_v18, 16 }
  0xab   : > { %4237 = vmatprep.subr.bf16.mxu0 %v4584_v49  ;;  %v2453_v0 = vsel %vm4942_vm2, %v2448_v7, %v5655_v48  ;;  %v2481_v2 = vor.u32 %v2480_v38, %v5712_v35  ;;  %v2486_v20 = vrot.slane %v2484_v1, 5  ;;  %v4596_v7 = vld [vmem:[%s4897_s28 + $0x48] sm:$0xff]  }
  0xac   : > { %v2518_v63 = vrot.slane %v2516_v4, 5  ;;  %v4598_v50 = vld [vmem:[%s6031_s1 + $0x228] sm:$0xff]  }
  0xad   : > { %4222 = vmatmul.mubr.bf16.gmra.mrb[12].mxu0 %v4583_v31  ;;  %4112 = vmatpush3.bf16.msra.mxu1 %v4585_v55  ;;  %v2470_v55 = vrot.slane %v2468_v29, 5  ;;  %v2491_v31 = vrot.slane %v2489_v21, 4  ;;  %v2508_v29 = vshll.u32 %v5729_v58, 16  ;;  %v2482_v24 = vrot.slane %v2481_v2, 4  ;;  %v4597_v21 = vld [vmem:[%s6031_s1 + $0x220] sm:$0xff]  }
  0xae   : > { %4238 = vmatpush3.bf16.msra.mxu0 %v4584_v49  ;;  %4241 = vmatprep.mubr.bf16.mxu0 %v3704_v17  ;;  %v2467_v49 = vrot.slane %v2465_v5, 4  ;;  %v4592_v17 = vld [vmem:[%s4897_s28 + $0x30] sm:$0xff]   ;;  %v2505_v5 = vor.u32 %v2504_v16, %v5719_v34  ;;  %v3726_v2 = vld [vmem:[%s4897_s28 + $0x60] sm:$0xe] }
  0xaf   : > { %4239 = vmatprep.subr.bf16.mxu0 %v4586_v23  ;;  %4289 = vmatprep.subr.bf16.mxu1 %v4589_v19  ;;  %v2495_v22 = vor.u32 %v2494_v14, %v2491_v31  ;;  %v3732_v31 = vrot.slane %v3724_v11, 9 }
  0xb0   : > { %4114 = vmatmul.mubr.bf16.vlgmr.msra.gmra.mrb[0].mxu1 %v4588_v45  ;;  %v2471_v10 = vor.u32 %v2470_v55, %v2467_v49  ;;  %v2526_v45 = vshrl.u32 %v5717_v18, 16  ;;  %v2506_v39 = vrot.slane %v2505_v5, 4  ;;  %v4599_v49 = vld [vmem:[%s4897_s28 + $0x54] sm:$0xff]  }
  0xb1   : > { %4297 = vmatpush3.bf16.msra.mxu1 %v4589_v19  ;;  %4117 = vmatprep.mubr.bf16.mxu1 %v4591_v51  ;;  %v2515_v51 = vrot.slane %v2513_v59, 4  ;;  %v2496_v62 = vrot.slane %v2495_v22, 4 }
  0xb2   : > { %4240 = vmatpush3.bf16.msra.mxu0 %v4586_v23  ;;  %4290 = vmatprep.subr.bf16.mxu1 %v5695_v54  ;;  %v2439_v23 = vsel %vm4942_vm2, %v2434_v60, %v5688_v33  ;;  %v2472_v30 = vrot.slane %v2471_v10, 4  ;;  %v5753_v33 = vrot.slane %v2522_v42, 5  ;;  %v2528_v57 = vrot.slane %v2526_v45, 4  ;;  %v5758_v60 = vld [vmem:[%s4897_s28 + $0x74] sm:$0x1] }
  0xb3   : > { %4257 = vmatprep.subr.bf16.mxu0 %v4589_v19  ;;  %v3707_v48 = vcombine.low %v2429_v41, %v2439_v23  ;;  %v2519_v55 = vor.u32 %v2518_v63, %v2515_v51  ;;  %v2532_v38 = vshll.u32 %v5758_v60, 16  ;;  %v2501_v16 = vsel %vm4942_vm2, %v2496_v62, %v5719_v34  ;;  %v4602_v51 = vld [vmem:[%s6031_s1 + $0x238] sm:$0xff]  }
  0xb4   : > { %v2783_v10 = vrot.slane %v5519_v26, 5  ;;  %v3725_v26 = vld [vmem:[%s4897_s28 + $0x54] sm:$0xe]  ;;  %v2822_v45 = vrot.slane %v5682_v32, 5  ;;  %v2787_v63 = vrot.slane %v5540_v25, 5  ;;  %v2832_v3 = vrot.slane %v5758_v60, 5 }
  0xb5   : > { %4242 = vmatmul.mubr.bf16.vlgmr.msra.gmra.mrb[0].mxu0 %v3705_v52  ;;  %4298 = vmatpush3.bf16.msra.mxu1 %v5695_v54  ;;  %v2529_v52 = vor.u32 %v2528_v57, %v5753_v33  ;;  %v2534_v4 = vrot.slane %v2532_v38, 5  ;;  %v3734_v57 = vrot.slane %v3726_v2, 9 }
  0xb6   : > { %4258 = vmatpush3.bf16.msra.mxu0 %v4589_v19  ;;  %4245 = vmatprep.mubr.bf16.mxu0 %v3706_v40  ;;  %v2463_v19 = vsel %vm4942_vm2, %v2458_v47, %v5700_v8  ;;  %v2808_v8 = vrot.slane %v5608_v44, 5  ;;  %v2780_v47 = vrot.slane %v5514_v9, 5  ;;  %v2477_v44 = vsel %vm4942_vm2, %v2472_v30, %v5712_v35  ;;  %v3720_v40 = vld [vmem:[%s4897_s28 + $0x18] sm:$0xe]  ;;  %v3721_v30 = vld [vmem:[%s4897_s28 + $0x24] sm:$0xe] }
  0xb7   : > { %4259 = vmatprep.subr.bf16.mxu0 %v5695_v54  ;;  %4291 = vmatprep.subr.bf16.mxu1 %v5707_v61  ;;  %v3708_v56 = vcombine.low %v2453_v0, %v2463_v19  ;;  %v2487_v9 = vsel %vm4942_vm2, %v2482_v24, %v2486_v20  ;;  %v2811_v35 = vrot.slane %v5650_v15, 5  ;;  %v3728_v41 = vrot.slane %v3720_v40, 9  ;;  %v4601_v0 = vld [vmem:[%s6031_s1 + $0x230] sm:$0xff]   ;;  %v4600_v19 = vld [vmem:[%s4897_s28 + $0x60] sm:$0xff]  }
  0xb8   : > { %4118 = vmatmul.mubr.bf16.gmra.mrb[4].mxu1 %v4592_v17  ;;  %v2810_v14 = vrot.slane %v2808_v8, 4  ;;  %v2815_v17 = vrot.slane %v5665_v6, 5  ;;  %v2782_v23 = vrot.slane %v2780_v47, 4  ;;  %v3709_v15 = vcombine.low %v2477_v44, %v2487_v9 }
  0xb9   : > { %4299 = vmatpush3.bf16.msra.mxu1 %v5707_v61  ;;  %4121 = vmatprep.mubr.bf16.mxu1 %v4595_v13  ;;  %v2520_v13 = vrot.slane %v2519_v55, 4  ;;  %v2530_v59 = vrot.slane %v2529_v52, 4  ;;  %v2809_v42 = vsel %vm5239_vm5, %v3732_v31, %v2808_v8  ;;  %v2781_v22 = vsel %vm5239_vm5, %v3728_v41, %v2780_v47  ;;  %v3722_v8 = vld [vmem:[%s4897_s28 + $0x30] sm:$0xe] }
  0xba   : > { %4260 = vmatpush3.bf16.msra.mxu0 %v5695_v54  ;;  %4292 = vmatprep.subr.bf16.mxu1 %v5738_v12  ;;  %v2510_v54 = vrot.slane %v2508_v29, 5  ;;  %v2812_v6 = vsel %vm5239_vm5, %v2810_v14, %v2811_v35  ;;  %v2817_v1 = vrot.slane %v2815_v17, 4  ;;  %v2784_v5 = vsel %vm5239_vm5, %v2782_v23, %v2783_v10  ;;  %v3723_v14 = vld [vmem:[%s4897_s28 + $0x3c] sm:$0xe] }
  0xbb   : > { %4261 = vmatprep.subr.bf16.mxu0 %v5707_v61  ;;  %v2525_v32 = vsel %vm4942_vm2, %v2520_v13, %v5753_v33  ;;  %v2535_v29 = vsel %vm4942_vm2, %v2530_v59, %v2534_v4  ;;  %v2825_v24 = vrot.slane %v5729_v58, 5  ;;  %v3729_v33 = vrot.slane %v3721_v30, 9 }
  0xbc   : > { %v3752_v62 = vcombine.low %v2781_v22, %v2784_v5  ;;  %v2829_v58 = vrot.slane %v5717_v18, 5  ;;  %v3730_v47 = vrot.slane %v3722_v8, 9  ;;  %v2796_v44 = vrot.slane %v2794_v36, 4 }
  0xbd   : > { %4246 = vmatmul.mubr.bf16.gmra.mrb[4].mxu0 %v3707_v48  ;;  %4300 = vmatpush3.bf16.msra.mxu1 %v5738_v12  ;;  %v3756_v48 = vcombine.low %v2809_v42, %v2812_v6  ;;  %v2788_v40 = vsel %vm5239_vm5, %v3729_v33, %v2787_v63  ;;  %v2804_v41 = vrot.slane %v5644_v27, 5 }
  0xbe   : > { %4262 = vmatpush3.bf16.msra.mxu0 %v5707_v61  ;;  %4249 = vmatprep.mubr.bf16.mxu0 %v3708_v56  ;;  %v2511_v61 = vsel %vm4942_vm2, %v2506_v39, %v2510_v54  ;;  %v2824_v56 = vrot.slane %v2822_v45, 4  ;;  %v2789_v39 = vrot.slane %v2787_v63, 4  ;;  %v2823_v54 = vsel %vm5239_vm5, %v3734_v57, %v2822_v45 }
  0xbf   : > { %4263 = vmatprep.subr.bf16.mxu0 %v5738_v12  ;;  %4293 = vmatprep.subr.bf16.mxu1 %v4597_v21  ;;  %v3710_v34 = vcombine.low %v2501_v16, %v2511_v61  ;;  %v2831_v38 = vrot.slane %v2829_v58, 4 }
  0xc0   : > { %4122 = vmatmul.mubr.bf16.gmra.mrb[8].mxu1 %v4596_v7  ;;  %v2826_v11 = vsel %vm5239_vm5, %v2824_v56, %v2825_v24  ;;  %v3727_v7 = vld [vmem:[%s4897_s28 + $0x6c] sm:$0xe]  ;;  %v2791_v9 = vsel %vm5239_vm5, %v2789_v39, %v2790_v46  ;;  %s4675_s28 = sshll.u32 %s4767_s9, 4  ;;  %s4676_s28 = int_to_ptr.vmem [resolvable:$false] %s4675_s28 }
  0xc1   : > { %4301 = vmatpush3.bf16.msra.mxu1 %v4597_v21  ;;  %4125 = vmatprep.mubr.bf16.mxu1 %v4599_v49  ;;  %v2797_v49 = vrot.slane %v5582_v37, 5  ;;  %v3758_v18 = vcombine.low %v2823_v54, %v2826_v11  ;;  %v3735_v52 = vrot.slane %v3727_v7, 9  ;;  %v2795_v37 = vsel %vm5239_vm5, %v3730_v47, %v2794_v36  ;;  %s4677_s11 = scalar_lea.vmem %s4676_s28, 2048  ;;  %p4678_p2 = scmp.lt.s32.totalorder %s5971_s16, %s4676_s28 }
  0xc2   : > { %4264 = vmatpush3.bf16.msra.mxu0 %v5738_v12  ;;  %4294 = vmatprep.subr.bf16.mxu1 %v4598_v50  ;;  %v2818_v12 = vrot.slane %v5710_v53, 5  ;;  %v3733_v53 = vrot.slane %v3725_v26, 9  ;;  %v3753_v60 = vcombine.low %v2788_v40, %v2791_v9  ;;  %v2833_v16 = vsel %vm5239_vm5, %v2831_v38, %v2832_v3  ;;  %p4679_p4 = scmp.lt.s32.totalorder %s4677_s11, %s4671_s8 }
  0xc3   : > { %4265 = vmatprep.subr.bf16.mxu0 %v4597_v21  ;;  %v2798_v31 = vsel %vm5239_vm5, %v2796_v44, %v2797_v49  ;;  %v2830_v35 = vsel %vm5239_vm5, %v3735_v52, %v2829_v58 }
  0xc4   : > { %v2819_v20 = vsel %vm5239_vm5, %v2817_v1, %v2818_v12  ;;  %v2816_v25 = vsel %vm5239_vm5, %v3733_v53, %v2815_v17  ;;  %v3754_v61 = vcombine.low %v2795_v37, %v2798_v31  ;;  %v3759_v23 = vcombine.low %v2830_v35, %v2833_v16  ;;  %p4680_p5 = por %p4679_p4, %p4678_p2 }
  0xc5   : > { %4250 = vmatmul.mubr.bf16.gmra.mrb[8].mxu0 %v3709_v15  ;;  %4302 = vmatpush3.bf16.msra.mxu1 %v4598_v50  ;;  %v3757_v55 = vcombine.low %v2816_v25, %v2819_v20 }
  0xc6   : > { %4266 = vmatpush3.bf16.msra.mxu0 %v4597_v21  ;;  %4253 = vmatprep.mubr.bf16.mxu0 %v3710_v34  ;;  %v3711_v21 = vcombine.low %v2525_v32, %v2535_v29  ;;  %p4681_p6 = pnand %p4680_p5, %p4674_p1 }
  0xc7   : > { %4267 = vmatprep.subr.bf16.mxu0 %v4598_v50  ;;  %4295 = vmatprep.subr.bf16.mxu1 %v4601_v0 }
  0xc8   : > { %4126 = vmatmul.mubr.bf16.gmra.mrb[12].mxu1 %v4600_v19 }
  0xc9   : > { %4303 = vmatpush3.bf16.msra.mxu1 %v4601_v0  ;;  %4281 = vmatprep.mubr.bf16.mxu1 %v3756_v48 }
  0xca   : > { %4268 = vmatpush3.bf16.msra.mxu0 %v4598_v50  ;;  %4296 = vmatprep.subr.bf16.mxu1 %v4602_v51  ;;  %v2801_v50 = vrot.slane %v5590_v43, 5  ;;  %v3731_v43 = vrot.slane %v3723_v14, 9 }
  0xcb   : > { %4269 = vmatprep.subr.bf16.mxu0 %v4601_v0 }
  0xcc   : > { %v2803_v17 = vrot.slane %v2801_v50, 4  ;;  %v2802_v10 = vsel %vm5239_vm5, %v3731_v43, %v2801_v50 }
  0xcd   : > { %4254 = vmatmul.mubr.bf16.gmra.mrb[12].mxu0 %v3711_v21  ;;  %4304 = vmatpush3.bf16.msra.mxu1 %v4602_v51 }
  0xce   : > { %4270 = vmatpush3.bf16.msra.mxu0 %v4601_v0  ;;  %4273 = vmatprep.mubr.bf16.mxu0 %v3752_v62  ;;  %v2805_v15 = vsel %vm5239_vm5, %v2803_v17, %v2804_v41  ;;  %v5864_v62 = vld [vmem:[%s6032_s2] ss:$0 sm:$0xff] }
  0xcf   : > { %4271 = vmatprep.subr.bf16.mxu0 %v4602_v51  ;;  %v3755_v13 = vcombine.low %v2802_v10, %v2805_v15 }
  0xd0   : > { %4282 = vmatmul.mubr.bf16.vlgmr.msra.gmra.mrb[16].mxu1 %v3757_v55 }
  0xd1   : > { %4285 = vmatprep.mubr.bf16.mxu1 %v3758_v18 }
  0xd2   : > { %4272 = vmatpush3.bf16.msra.mxu0 %v4602_v51 }
  0xd5   : > { %4274 = vmatmul.mubr.bf16.vlgmr.msra.gmra.mrb[0].mxu0 %v3753_v60 }
  0xd6   : > { %4277 = vmatprep.mubr.bf16.mxu0 %v3754_v61 }
  0xd8   : > { %4286 = vmatmul.mubr.bf16.gmra.mrb[20].mxu1 %v3759_v23 }
  0xdd   : > { %4278 = vmatmul.mubr.bf16.gmra.mrb[4].mxu0 %v3755_v13 }
 0x183   : > { %v4115_v59 = vpop.f32.mrb[0].mxu1 }
 0x184   : > { %v1271_v4 = vpop.f32.mrb[1].mxu1 }
 0x185   : > { %v4116_v34 = vpop.f32.mrb[2].mxu1 }
 0x186   : > { %v1274_v42 = vpop.f32.mrb[3].mxu1 }
 0x18b   : > { %v5853_v6 = vpop.f32.mrb[4].mxu1 }
 0x18c   : > { %v5855_v26 = vpop.f32.mrb[5].mxu1 }
 0x18d   : > { %v5857_v27 = vpop.f32.mrb[6].mxu1 }
 0x18e   : > { %v5859_v45 = vpop.f32.mrb[7].mxu1 }
 0x193   : > { %v4123_v0 = vpop.f32.mrb[8].mxu1 }
 0x194   : > { %v1303_v2 = vpop.f32.mrb[9].mxu1 }
 0x195   : > { %v4124_v1 = vpop.f32.mrb[10].mxu1 }
 0x196   : > { %v1306_v28 = vpop.f32.mrb[11].mxu1 }
 0x198   : > { %v4251_v12 = vpop.f32.mrb[8].mxu0 }
 0x199   : > { %v4313_v19 = vadd.f32 %v4251_v12, %v4123_v0  ;;  %v2699_v22 = vpop.f32.mrb[9].mxu0 }
 0x19a   : > { %v4315_v5 = vadd.f32 %v2699_v22, %v1303_v2  ;;  %v4252_v32 = vpop.f32.mrb[10].mxu0 }
 0x19b   : > { %v4317_v29 = vadd.f32 %v4252_v32, %v4124_v1  ;;  %v2702_v48 = vpop.f32.mrb[11].mxu0  ;;  %v4127_v30 = vpop.f32.mrb[12].mxu1 }
 0x19c   : > { %v4319_v53 = vadd.f32 %v2702_v48, %v1306_v28  ;;  %v1319_v51 = vpop.f32.mrb[13].mxu1 }
 0x19d   : > { %v4128_v63 = vpop.f32.mrb[14].mxu1 }
 0x19e   : > { %v1322_v57 = vpop.f32.mrb[15].mxu1 }
 0x1a0   : > { %v4255_v56 = vpop.f32.mrb[12].mxu0 }
 0x1a1   : > { %v4321_v24 = vadd.f32 %v4255_v56, %v4127_v30  ;;  %v2715_v36 = vpop.f32.mrb[13].mxu0 }
 0x1a2   : > { %v4323_v33 = vadd.f32 %v2715_v36, %v1319_v51  ;;  %v4256_v20 = vpop.f32.mrb[14].mxu0 }
 0x1a3   : > { %v4325_v8 = vadd.f32 %v4256_v20, %v4128_v63  ;;  %v2718_v21 = vpop.f32.mrb[15].mxu0  ;;  %v4283_v25 = vpop.f32.mrb[16].mxu1 }
 0x1a4   : > { %v5866_v58 = vadd.f32 %v2718_v21, %v1322_v57  ;;  %v4314_v39 = vadd.f32 %v4313_v19, %v4283_v25  ;;  %v2997_v46 = vpop.f32.mrb[17].mxu1 }
 0x1a5   : > { %v4316_v54 = vadd.f32 %v4315_v5, %v2997_v46  ;;  %v4284_v11 = vpop.f32.mrb[18].mxu1 }
 0x1a6   : > { %v5869_v7 = vadd.f32 %v4314_v39, %v5864_v62  ;;  %v4318_v47 = vadd.f32 %v4317_v29, %v4284_v11  ;;  %v3000_v44 = vpop.f32.mrb[19].mxu1 }
 0x1a7   : > { %v5872_v49 = vadd.f32 %v4316_v54, %v5864_v62  ;;  %v4320_v55 = vadd.f32 %v4319_v53, %v3000_v44 }
 0x1a8   : > { %v4275_v18 = vpop.f32.mrb[0].mxu0  ;;  %v3077_v52 = vsub.f32 0.0, %v5869_v7  ;;  %v5876_v38 = vadd.f32 %v4318_v47, %v5864_v62 }
 0x1a9   : > { %v4305_v3 = vadd.f32 %v4275_v18, %v4115_v59  ;;  %v2965_v40 = vpop.f32.mrb[1].mxu0  ;;  %v3075_v9 = vsub.f32 0.0, %v5872_v49  ;;  %v5880_v50 = vadd.f32 %v4320_v55, %v5864_v62 }
 0x1aa   : > { %v3103_v37 = vmul.f32 1.442695, %v3077_v52  ;;  %v4306_v31 = vadd.f32 %v2965_v40, %v1271_v4  ;;  %v4276_v14 = vpop.f32.mrb[2].mxu0  ;;  %v3078_v60 = vsub.f32 0.0, %v5876_v38 }
 0x1ab   : > { %v5884_v35 = vadd.f32 %v4305_v3, %v5864_v62  ;;  %v3099_v16 = vmul.f32 1.442695, %v3075_v9  ;;  %v4307_v61 = vadd.f32 %v4276_v14, %v4116_v34  ;;  %v2968_v43 = vpop.f32.mrb[3].mxu0  ;;  %v3076_v17 = vsub.f32 0.0, %v5880_v50  ;;  %v4287_v41 = vpop.f32.mrb[20].mxu1 }
 0x1ac   : > { %4603 = vpow2.f32 %v3103_v37  ;;  %v5888_v23 = vadd.f32 %v4306_v31, %v5864_v62  ;;  %v3105_v10 = vmul.f32 1.442695, %v3078_v60  ;;  %v4308_v15 = vadd.f32 %v2968_v43, %v1274_v42  ;;  %v3013_v13 = vpop.f32.mrb[21].mxu1 }
 0x1ad   : > { %v3069_v59 = vsub.f32 0.0, %v5884_v35  ;;  %4605 = vpow2.f32 %v3099_v16  ;;  %v5892_v4 = vadd.f32 %v4307_v61, %v5864_v62  ;;  %v3101_v0 = vmul.f32 1.442695, %v3076_v17  ;;  %v4288_v2 = vpop.f32.mrb[22].mxu1 }
 0x1ae   : > { %v3067_v34 = vsub.f32 0.0, %v5888_v23  ;;  %4607 = vpow2.f32 %v3105_v10  ;;  %v5896_v1 = vadd.f32 %v4308_v15, %v5864_v62  ;;  %v4322_v28 = vadd.f32 %v4321_v24, %v4287_v41  ;;  %v3016_v12 = vpop.f32.mrb[23].mxu1 }
 0x1af   : > { %v3087_v19 = vmul.f32 1.442695, %v3069_v59  ;;  %v3070_v42 = vsub.f32 0.0, %v5892_v4  ;;  %4609 = vpow2.f32 %v3101_v0  ;;  %v4324_v22 = vadd.f32 %v4323_v33, %v3013_v13 }
 0x1b0   : > { %v3083_v5 = vmul.f32 1.442695, %v3067_v34  ;;  %v3068_v32 = vsub.f32 0.0, %v5896_v1  ;;  %v4279_v29 = vpop.f32.mrb[4].mxu0  ;;  %v5901_v48 = vadd.f32 %v4322_v28, %v5864_v62  ;;  %v4326_v30 = vadd.f32 %v4325_v8, %v4288_v2 }
 0x1b1   : > { %4611 = vpow2.f32 %v3087_v19  ;;  %v3089_v53 = vmul.f32 1.442695, %v3070_v42  ;;  %v4309_v51 = vadd.f32 %v4279_v29, %v5853_v6  ;;  %v2981_v63 = vpop.f32.mrb[5].mxu0  ;;  %v5905_v57 = vadd.f32 %v4324_v22, %v5864_v62 }
 0x1b2   : > { %4613 = vpow2.f32 %v3083_v5  ;;  %v3085_v56 = vmul.f32 1.442695, %v3068_v32  ;;  %v3081_v24 = vsub.f32 0.0, %v5901_v48  ;;  %v4310_v36 = vadd.f32 %v2981_v63, %v5855_v26  ;;  %v4280_v33 = vpop.f32.mrb[6].mxu0 }
 0x1b3   : > { %4615 = vpow2.f32 %v3089_v53  ;;  %v5910_v20 = vadd.f32 %v4309_v51, %v5864_v62  ;;  %v3079_v8 = vsub.f32 0.0, %v5905_v57  ;;  %v4311_v21 = vadd.f32 %v4280_v33, %v5857_v27  ;;  %v2984_v6 = vpop.f32.mrb[7].mxu0 }
 0x1b4   : > { %4617 = vpow2.f32 %v3085_v56  ;;  %v3111_v25 = vmul.f32 1.442695, %v3081_v24  ;;  %v4312_v54 = vadd.f32 %v2984_v6, %v5859_v45  ;;  %v5917_v26 = vadd.f32 %v4310_v36, %v5864_v62 }
 0x1b5   : > { %v3073_v39 = vsub.f32 0.0, %v5910_v20  ;;  %v3107_v46 = vmul.f32 1.442695, %v3079_v8  ;;  %v4328_v47 = vadd.f32 %v5866_v58, %v3016_v12  ;;  %v5921_v9 = vadd.f32 %v4311_v21, %v5864_v62 }
 0x1b6   : > { %v4604_v11 = vpop.eup %4603  ;;  %4619 = vpow2.f32 %v3111_v25  ;;  %v3071_v37 = vsub.f32 0.0, %v5917_v26  ;;  %v5925_v31 = vadd.f32 %v4326_v30, %v5864_v62  ;;  %v5928_v14 = vadd.f32 %v4312_v54, %v5864_v62 }
 0x1b7   : > { %v4606_v44 = vpop.eup %4605  ;;  %v3125_v55 = vadd.f32 1.0, %v4604_v11  ;;  %4621 = vpow2.f32 %v3107_v46  ;;  %v3095_v40 = vmul.f32 1.442695, %v3073_v39  ;;  %v5931_v61 = vadd.f32 %v4328_v47, %v5864_v62 }
 0x1b8   : > { %v4608_v18 = vpop.eup %4607  ;;  %v3123_v52 = vadd.f32 1.0, %v4606_v44  ;;  %v3074_v41 = vsub.f32 0.0, %v5921_v9  ;;  %v3091_v13 = vmul.f32 1.442695, %v3071_v37  ;;  %v3082_v59 = vsub.f32 0.0, %v5925_v31 }
 0x1b9   : > { %v4610_v27 = vpop.eup %4609  ;;  %4623 = vrcp.f32 %v3125_v55  ;;  %v3126_v3 = vadd.f32 1.0, %v4608_v18  ;;  %v3072_v2 = vsub.f32 0.0, %v5928_v14  ;;  %v3080_v62 = vsub.f32 0.0, %v5931_v61 }
 0x1ba   : > { %4625 = vrcp.f32 %v3123_v52  ;;  %v3124_v45 = vadd.f32 1.0, %v4610_v27  ;;  %v3097_v28 = vmul.f32 1.442695, %v3074_v41  ;;  %v3113_v19 = vmul.f32 1.442695, %v3082_v59 }
 0x1bb   : > { %v4612_v58 = vpop.eup %4611  ;;  %4627 = vrcp.f32 %v3126_v3  ;;  %v3093_v22 = vmul.f32 1.442695, %v3072_v2  ;;  %v3109_v32 = vmul.f32 1.442695, %v3080_v62 }
 0x1bc   : > { %v4614_v60 = vpop.eup %4613  ;;  %v3117_v16 = vadd.f32 1.0, %v4612_v58  ;;  %4629 = vrcp.f32 %v3124_v45 }
 0x1bd   : > { %v4616_v43 = vpop.eup %4615  ;;  %v3115_v17 = vadd.f32 1.0, %v4614_v60  ;;  %4631 = vpow2.f32 %v3095_v40 }
 0x1be   : > { %v4618_v10 = vpop.eup %4617  ;;  %4633 = vrcp.f32 %v3117_v16  ;;  %v3118_v15 = vadd.f32 1.0, %v4616_v43 }
 0x1bf   : > { %4635 = vrcp.f32 %v3115_v17  ;;  %v3116_v0 = vadd.f32 1.0, %v4618_v10 }
 0x1c0   : > { %4637 = vrcp.f32 %v3118_v15  ;;  %v4620_v34 = vpop.eup %4619 }
 0x1c1   : > { %4639 = vrcp.f32 %v3116_v0  ;;  %v4622_v12 = vpop.eup %4621 }
 0x1c2   : > { %4641 = vpow2.f32 %v3091_v13 }
 0x1c3   : > { %v4624_v42 = vpop.eup %4623  ;;  %4643 = vpow2.f32 %v3097_v28 }
 0x1c4   : > { %v4626_v5 = vpop.eup %4625  ;;  %v3173_v53 = vmul.f32 %v4624_v42, %v5869_v7  ;;  %4645 = vpow2.f32 %v3113_v19  ;;  %v3129_v7 = vadd.f32 1.0, %v4620_v34 }
 0x1c5   : > { %v4628_v29 = vpop.eup %4627  ;;  %v3171_v56 = vmul.f32 %v4626_v5, %v5872_v49  ;;  %4647 = vpow2.f32 %v3093_v22 }
 0x1c6   : > { %v4630_v30 = vpop.eup %4629  ;;  %v3174_v51 = vmul.f32 %v4628_v29, %v5876_v38  ;;  %4649 = vpow2.f32 %v3109_v32 }
 0x1c7   : > { %v4632_v63 = vpop.eup %4631  ;;  %v3172_v24 = vmul.f32 %v4630_v30, %v5880_v50  ;;  %v3127_v50 = vadd.f32 1.0, %v4622_v12  ;;  %4651 = vrcp.f32 %v3129_v7 }
 0x1c8   : > { %v4634_v36 = vpop.eup %4633  ;;  %v3838_v33 = vpack.c.bf16 %v3174_v51, %v3173_v53  ;;  %v3121_v11 = vadd.f32 1.0, %v4632_v63 }
 0x1c9   : > { %v4636_v8 = vpop.eup %4635  ;;  %v3833_v21 = vpack.c.bf16 %v3172_v24, %v3171_v56  ;;  %v3165_v25 = vmul.f32 %v4634_v36, %v5884_v35  ;;  %4653 = vrcp.f32 %v3127_v50 }
 0x1ca   : > { %v4638_v6 = vpop.eup %4637  ;;  %3854 = vst [vmem:[%s5944_s21 + $0x28] sm:$0xff] %v3838_v33   ;;  %v3163_v46 = vmul.f32 %v4636_v8, %v5888_v23  ;;  %4655 = vrcp.f32 %v3121_v11 }
 0x1cb   : > { %v4640_v38 = vpop.eup %4639  ;;  %v3166_v49 = vmul.f32 %v4638_v6, %v5892_v4  ;;  %3853 = vst [vmem:[%s5944_s21 + $0x20] sm:$0xff] %v3833_v21  }
 0x1cc   : > { %v4642_v39 = vpop.eup %4641  ;;  %v3164_v54 = vmul.f32 %v4640_v38, %v5896_v1 }
 0x1cd   : > { %v3818_v47 = vpack.c.bf16 %v3166_v49, %v3165_v25  ;;  %v3119_v44 = vadd.f32 1.0, %v4642_v39  ;;  %v4644_v18 = vpop.eup %4643 }
 0x1ce   : > { %v3813_v55 = vpack.c.bf16 %v3164_v54, %v3163_v46  ;;  %v4646_v35 = vpop.eup %4645  ;;  %v3122_v4 = vadd.f32 1.0, %v4644_v18 }
 0x1cf   : > { %3850 = vst [vmem:[%s5944_s21 + $0x8] sm:$0xff] %v3818_v47   ;;  %v4648_v52 = vpop.eup %4647  ;;  %4657 = vrcp.f32 %v3119_v44  ;;  %v3130_v27 = vadd.f32 1.0, %v4646_v35 }
 0x1d0   : > { %3814 = vst [vmem:[%s5944_s21] sm:$0xff] %v3813_v55   ;;  %v4650_v23 = vpop.eup %4649  ;;  %4659 = vrcp.f32 %v3122_v4  ;;  %v3120_v1 = vadd.f32 1.0, %v4648_v52 }
 0x1d1   : > { %4661 = vrcp.f32 %v3130_v27  ;;  %v3128_v3 = vadd.f32 1.0, %v4650_v23  ;;  %v4652_v40 = vpop.eup %4651 }
 0x1d2   : > { %4663 = vrcp.f32 %v3120_v1  ;;  %v3177_v10 = vmul.f32 %v4652_v40, %v5901_v48 }
 0x1d3   : > { %4665 = vrcp.f32 %v3128_v3  ;;  %v4654_v45 = vpop.eup %4653 }
 0x1d4   : > { %v4656_v37 = vpop.eup %4655 }
 0x1d5   : > { %v3169_v43 = vmul.f32 %v4656_v37, %v5910_v20 }
 0x1d9   : > { %v4658_v58 = vpop.eup %4657 }
 0x1da   : > { %v4660_v60 = vpop.eup %4659  ;;  %v3167_v59 = vmul.f32 %v4658_v58, %v5917_v26 }
 0x1db   : > { %v4662_v16 = vpop.eup %4661  ;;  %v3170_v17 = vmul.f32 %v4660_v60, %v5921_v9  ;;  %v3175_v9 = vmul.f32 %v4654_v45, %v5905_v57 }
 0x1dc   : > { %v4664_v41 = vpop.eup %4663  ;;  %v3178_v15 = vmul.f32 %v4662_v16, %v5925_v31 }
 0x1dd   : > { %v4666_v13 = vpop.eup %4665  ;;  %v3828_v0 = vpack.c.bf16 %v3170_v17, %v3169_v43  ;;  %v3168_v20 = vmul.f32 %v4664_v41, %v5928_v14 }
 0x1de   : > { %v3848_v2 = vpack.c.bf16 %v3178_v15, %v3177_v10  ;;  %v3176_v62 = vmul.f32 %v4666_v13, %v5931_v61 }
 0x1df   : > { %3852 = vst [vmem:[%s5944_s21 + $0x18] sm:$0xff] %v3828_v0   ;;  %v3823_v48 = vpack.c.bf16 %v3168_v20, %v3167_v59 }
 0x1e0   : > { %3856 = vst [vmem:[%s5944_s21 + $0x38] sm:$0xff] %v3848_v2   ;;  %v3843_v26 = vpack.c.bf16 %v3176_v62, %v3175_v9 }
 0x1e1   : > { %3851 = vst [vmem:[%s5944_s21 + $0x10] sm:$0xff] %v3823_v48  }
 0x1e2   : > { %3855 = vst [vmem:[%s5944_s21 + $0x30] sm:$0xff] %v3843_v26  }
 0x1e3   : > { %4684 = shalt.err (!%p4681_p6)
}
 0x1e4   : > { %s4685_s20 = scalar_lea.hbm %s5969_s6, 1024  ;;  %s4689_s24 = scalar_lea.hbm %s6033_s3, 4096 }
 0x1e5   : > { %p4686_p7 = scmp.ne.s32.totalorder %s5969_s6, %s4685_s20  ;;  %p4690_p11 = scmp.lt.u32.totalorder %s5969_s6, %s6033_s3 }
 0x1e6   : > { %p4691_p12 = scmp.lt.u32.totalorder %s4689_s24, %s4685_s20  ;;  %p4693_p0 = scmp.lt.u32.totalorder %s4685_s20, %s5969_s6 }
 0x1e7   : > { %p4687_p9 = pnand %p4686_p7, %p4841_p3 }
 0x1e8   : > { %p4692_p13 = por %p4691_p12, %p4690_p11 }
 0x1e9   : > { %p4688_p10 = pneg %p4687_p9 }
 0x1ea   : > { %p4694_p1 = por %p4693_p0, %p4692_p13 }
 0x1ec   : > { %p4695_p2 = pnand %p4694_p1, %p4688_p10 }
 0x1ee   : > { %4698 = shalt.err (!%p4695_p2)
}
 0x1ef   : > { %s4768_s15 = smov 64   ;;  %s4769_s5 = smov 4  }
 0x1f0   : > { %4434 = dma.vmem_to_hbm [thread:$0]  (%p4841_p3), %s5971_s16, 1024, %s5969_s6, %s5978_s7, %s4768_s15, %s4768_s15, %s4769_s5  }
 0x1f1 PF: > { %p4440_p4 = scmp.ge.s32.totalorder %s4765_s19, 2  ;;  %s3291_s29 = sand.u32 1, %s4737_s12  }
 0x1f2   : > { %s3292_s8 = scalar_lea.sflag [#allocation3], %s3291_s29 }
 0x1f3   : > { %p4437_p5 = pnand %p4440_p4, %p4850_p8 }
 0x1f5   : > { %4732 = dma.done.wait (!%p4437_p5), %s3292_s8, 1024  }
 0x1f6   : > { %4734 = vsyncadd (!%p4437_p5), %s3292_s8, 4294966272  ;;  %s16_s19 = sadd.s32 1, %s4765_s19   ;;  %s6049_s12 = smov %s4741_s13 }
 0x1f7   : > { %p13_p6 = scmp.ge.s32.totalorder %s16_s19, 6   ;;  %s6050_s13 = smov %s4745_s14 }
 0x1f8   : > { %s6051_s14 = smov %s4859_s30  ;;  %s6052_s15 = smov %s4757_s17 }
 0x1f9   : > { %s6053_s16 = smov %s4761_s18  ;;  %s6054_s17 = smov %s6057_s22 }
 0x1fa   : > { %s6055_s18 = smov %s6061_s23  ;;  %15 = sbr.rel (!%p13_p6) target bundleno = 5 (0x5), region = 78 }
 0x201   :  { %3297 = vsyncpa [#allocation3], 1 }
 0x202   :  { %3299 = vsyncpa [#allocation3 + $0x1], 1 }

</bundles_post_ra>
